<compile_context>
chip_gen: v7x
topology: tpu7x:2x2x1
jax: 0.10.0
libtpu: 0.0.40
codegen_flags: <defaults>
</compile_context>

<pallas_src>
import math

import numpy as np
import jax
import jax.numpy as jnp
from jax.experimental import pallas as pl
from jax.experimental.pallas import tpu as pltpu


# ----------------------------------------------------------------------------
# Host-side selector-matrix builders (numpy)
# ----------------------------------------------------------------------------
def _nearest_src_indices(in_size: int, out_size: int) -> np.ndarray:
    """src = floor(dst * in / out)  (PyTorch legacy 'nearest')."""
    return (np.arange(out_size) * in_size) // out_size


def _flat_gather_matrix_np(H, W, Hout, Wout, Kp) -> np.ndarray:
    """(H*W, Kp) 0/1 matrix; column o selects the flat input pixel feeding flat
    output o.  Columns [Hout*Wout, Kp) are zero padding (lane-dense stores)."""
    src_h = _nearest_src_indices(H, Hout)
    src_w = _nearest_src_indices(W, Wout)
    flat_src = (src_h[:, None] * W + src_w[None, :]).reshape(-1)
    g = np.zeros((H * W, Kp), dtype=np.float32)
    g[flat_src, np.arange(Hout * Wout)] = 1.0
    return g


def _expansion_matrix_np(in_size, out_size) -> np.ndarray:
    """(out, in) 0/1 matrix: E[i, j] = 1 iff j == floor(i * in / out)."""
    src = _nearest_src_indices(in_size, out_size)
    e = np.zeros((out_size, in_size), dtype=np.float32)
    e[np.arange(out_size), src] = 1.0
    return e


def _expansion_tile_np(H, Hout, t_h, hin) -> np.ndarray:
    """Block-periodic row-expansion tile (t_h, hin) valid for every output-row
    tile when t_h | Hout and (t_h*H) % Hout == 0."""
    src = (np.arange(t_h) * H) // Hout        # local source row within the tile
    e = np.zeros((t_h, hin), dtype=np.float32)
    e[np.arange(t_h), src] = 1.0
    return e


# ----------------------------------------------------------------------------
# Generation-aware budgets
# ----------------------------------------------------------------------------
_DEFAULT_VMEM_CAP = 64 * 1024 * 1024      # assume the smallest generation (v7x)


def _vmem_capacity_bytes() -> int:
    try:
        cap = int(pltpu.get_tpu_info().vmem_capacity_bytes)
        if cap > 0:
            return cap
    except Exception:
        pass
    return _DEFAULT_VMEM_CAP


def _budgets():
    cap = _vmem_capacity_bytes()
    vmem_limit = min(cap // 2, 64 * 1024 * 1024)   # requested scoped-VMEM limit
    g_cap = cap // 16           # max bytes for the flattened bf16 gather matrix
    a_out_block = cap // 32     # Path A per-step output block budget
    b_out_block = cap // 64     # Path B per-step output block budget
    return vmem_limit, g_cap, a_out_block, b_out_block


def _sublane_multiple(dtype) -> int:
    # dtype-aware packing: 8 rows for f32, 16 for bf16, 32 for int8/fp8
    return max(8, 32 // np.dtype(dtype).itemsize)


def _round_up(a: int, m: int) -> int:
    return -(-a // m) * m


# ----------------------------------------------------------------------------
# Exact 3-way bf16 bit-split (in-kernel, VPU only)
# ----------------------------------------------------------------------------
_HI_MASK = 0xFFFF0000   # sign + exponent + top 7 explicit mantissa bits == bf16 bits


def _split3_bf16(x):
    """Split an f32 array into bf16 parts a + b + c == x exactly (truncation split).

    Each part carries <= 8 significand bits, so it is exactly bf16-representable;
    a 0/1 selector matmul in native bf16 (f32 accumulate) followed by the f32 sum
    of the three partial results reproduces the original f32 bit pattern."""
    mask = jnp.uint32(_HI_MASK)
    xb = pltpu.bitcast(x, jnp.uint32)
    a = pltpu.bitcast(xb & mask, jnp.float32)
    r = x - a                                   # exact (<= 16 remaining bits)
    rb = pltpu.bitcast(r, jnp.uint32)
    b = pltpu.bitcast(rb & mask, jnp.float32)
    c = r - b                                   # exact (<= 8 remaining bits)
    return (a.astype(jnp.bfloat16), b.astype(jnp.bfloat16), c.astype(jnp.bfloat16))


# ----------------------------------------------------------------------------
# Kernels
# ----------------------------------------------------------------------------
def _flat_kernel(x_ref, gt_ref, o_ref):
    # x_ref: (bc, H*W)   gt_ref: (H*W, Kp) bf16 0/1 selector   o_ref: (bc, Kp)
    g = gt_ref[...]
    x = x_ref[...]
    if x.dtype == jnp.bfloat16:
        out = jnp.dot(x, g, preferred_element_type=jnp.float32)
    else:
        if x.dtype != jnp.float32:
            x = x.astype(jnp.float32)       # integer dtypes: exact for |x| < 2^24
        a, b, c = _split3_bf16(x)
        out = (jnp.dot(a, g, preferred_element_type=jnp.float32)
               + jnp.dot(b, g, preferred_element_type=jnp.float32))
        out = out + jnp.dot(c, g, preferred_element_type=jnp.float32)
    o_ref[...] = out.astype(o_ref.dtype)


def _plane_kernel(x_ref, eh_ref, ewt_ref, o_ref):
    # x_ref:  (cb, hin, W)     channel-batched input tile
    # eh_ref: (t_h, hin) bf16  block-periodic row-expansion selector
    # ewt_ref:(W, Wout)  bf16  column-expansion selector (pre-transposed)
    # o_ref:  (cb, t_h, Wout)
    cb = x_ref.shape[0]
    eh = jnp.broadcast_to(eh_ref[...][None], (cb,) + eh_ref.shape)
    ewt = jnp.broadcast_to(ewt_ref[...][None], (cb,) + ewt_ref.shape)

    x = x_ref[...]
    if x.dtype == jnp.bfloat16:
        parts = (x,)
    else:
        if x.dtype != jnp.float32:
            x = x.astype(jnp.float32)
        parts = _split3_bf16(x)

    out = None
    for p in parts:
        rows = jnp.einsum("chk,ckw->chw", eh, p,
                          preferred_element_type=jnp.float32)   # row selection
        rows = rows.astype(jnp.bfloat16)                        # exact (values of p)
        term = jnp.einsum("chw,cwv->chv", rows, ewt,
                          preferred_element_type=jnp.float32)   # column selection
        out = term if out is None else out + term
    o_ref[...] = out.astype(o_ref.dtype)


# ----------------------------------------------------------------------------
# Wrappers
# ----------------------------------------------------------------------------
def _upsample_flat(x, H, W, Hout, Wout, vmem_limit, out_block_budget):
    N, C = x.shape[0], x.shape[1]
    NC = N * C
    K_in = H * W
    K_out = Hout * Wout
    Kp = _round_up(K_out, 128)              # lane-dense unmasked stores
    itemsize = np.dtype(x.dtype).itemsize

    x2 = x.reshape(NC, K_in)
    gt = jnp.asarray(_flat_gather_matrix_np(H, W, Hout, Wout, Kp),
                     dtype=jnp.bfloat16)

    sub = _sublane_multiple(x.dtype)
    rows_cap = max(sub, (out_block_budget // max(1, Kp * itemsize)) // sub * sub)
    if NC <= rows_cap:
        bc = NC
        if NC >= 2 * sub:
            # >= 2 grid steps so both v7x TensorCores get work (free on v5e/v6e)
            bc = _round_up((NC + 1) // 2, sub)
    else:
        bc = rows_cap
    grid = (pl.cdiv(NC, bc),)

    out2 = pl.pallas_call(
        _flat_kernel,
        out_shape=jax.ShapeDtypeStruct((NC, Kp), x.dtype),
        grid_spec=pltpu.PrefetchScalarGridSpec(
            num_scalar_prefetch=0,
            grid=grid,
            in_specs=[
                pl.BlockSpec((bc, K_in), lambda i: (i, 0)),
                # grid-invariant gather matrix: constant index_map -> one DMA
                # TODO(synk): pipeline_mode=pl.Buffered(1) once confirmed supported.
                pl.BlockSpec((K_in, Kp), lambda i: (0, 0)),
            ],
            out_specs=pl.BlockSpec((bc, Kp), lambda i: (i, 0)),
        ),
        compiler_params=pltpu.CompilerParams(
            dimension_semantics=("parallel",),
            vmem_limit_bytes=vmem_limit),
    )(x2, gt)

    if Kp != K_out:
        out2 = out2[:, :K_out]
    return out2.reshape(N, C, Hout, Wout)


def _choose_h_tile(H, Hout, target_rows=256):
    """Largest output-row tile t <= target with t | Hout, (t*H) % Hout == 0 and an
    8-aligned matching input tile, so BlockSpecs stay clean (no OOB clamping)."""
    if Hout <= max(target_rows, 8):
        return Hout, H
    best = (Hout, H)
    t = 8
    while t <= target_rows:
        if Hout % t == 0 and (t * H) % Hout == 0:
            hin = (t * H) // Hout
            if hin % 8 == 0 or hin == H:
                best = (t, hin)
        t += 8
    return best


def _upsample_planes(x, H, W, Hout, Wout, vmem_limit, out_block_budget):
    N, C = x.shape[0], x.shape[1]
    NC = N * C
    itemsize = np.dtype(x.dtype).itemsize

    t_h, hin = _choose_h_tile(H, Hout)
    h_tiles = Hout // t_h

    eh = jnp.asarray(_expansion_tile_np(H, Hout, t_h, hin), dtype=jnp.bfloat16)
    ewt = jnp.asarray(_expansion_matrix_np(W, Wout).T, dtype=jnp.bfloat16)

    cb = max(1, min(NC, out_block_budget // max(1, t_h * Wout * itemsize), 64))
    if h_tiles * pl.cdiv(NC, cb) < 2 and NC >= 2:
        cb = (NC + 1) // 2        # >= 2 grid steps for v7x's two TensorCores

    x3 = x.reshape(NC, H, W)
    out3 = pl.pallas_call(
        _plane_kernel,
        out_shape=jax.ShapeDtypeStruct((NC, Hout, Wout), x.dtype),
        grid_spec=pltpu.PrefetchScalarGridSpec(
            num_scalar_prefetch=0,
            grid=(pl.cdiv(NC, cb), h_tiles),
            in_specs=[
                pl.BlockSpec((cb, hin, W), lambda i, j: (i, j, 0)),
                # grid-invariant selector tiles (constant index_map -> one DMA)
                pl.BlockSpec((t_h, hin), lambda i, j: (0, 0)),
                pl.BlockSpec((W, Wout), lambda i, j: (0, 0)),
            ],
            out_specs=pl.BlockSpec((cb, t_h, Wout), lambda i, j: (i, j, 0)),
        ),
        compiler_params=pltpu.CompilerParams(
            dimension_semantics=("parallel", "parallel"),
            vmem_limit_bytes=vmem_limit),
    )(x3, eh, ewt)
    # TODO(synk): also tile Wout in multiples of 128 for very large planes
    # (lane-dense stores + v7x 64 MiB VMEM).
    return out3.reshape(N, C, Hout, Wout)


def upsample_nearest(x: jnp.ndarray, scale_factor) -> jnp.ndarray:
    """Nearest-neighbour upsample of an NCHW tensor via Pallas TPU kernels."""
    N, C, H, W = x.shape
    if isinstance(scale_factor, (tuple, list)):
        sh, sw = scale_factor
    else:
        sh = sw = scale_factor
    Hout = int(math.floor(H * sh))
    Wout = int(math.floor(W * sw))

    vmem_limit, g_cap, a_out_block, b_out_block = _budgets()
    Kp = _round_up(Hout * Wout, 128)
    g_bytes = H * W * Kp * 2                 # gather matrix is bf16
    if g_bytes <= g_cap:
        return _upsample_flat(x, H, W, Hout, Wout, vmem_limit, a_out_block)
    return _upsample_planes(x, H, W, Hout, Wout, vmem_limit, b_out_block)


class Upsample:
    """Pallas equivalent of the PyTorch Upsample module (mode='nearest')."""

    def __init__(self, scale_factor, mode="nearest"):
        # TODO(synk): bilinear / bicubic / nearest-exact modes not implemented.
        assert mode == "nearest", "only 'nearest' mode is implemented"
        self.scale_factor = scale_factor
        self.mode = mode

    def __call__(self, x):
        return upsample_nearest(x, self.scale_factor)


# ----------------------------------------------------------------------------
# Self-test
# ----------------------------------------------------------------------------
if __name__ == "__main__":
    key = jax.random.PRNGKey(0)
    k1, k2, k3, k4, k5 = jax.random.split(key, 5)

    def _ref(x, s):
        return jnp.repeat(jnp.repeat(x, s, axis=2), s, axis=3)

    up2 = Upsample(scale_factor=2)

    # Path A, f32 (bit-exact via the 3-way bf16 bit-split)
    x = jax.random.normal(k1, (2, 4, 16, 16), dtype=jnp.float32)
    y = jax.block_until_ready(up2(x))
    assert y.shape == (2, 4, 32, 32), y.shape
    np.testing.assert_array_equal(np.asarray(y), np.asarray(_ref(x, 2)))

    # Path A, non-square plane (flattened gather ordering)
    x2 = jax.random.normal(k2, (1, 3, 8, 12), dtype=jnp.float32)
    y2 = jax.block_until_ready(up2(x2))
    assert y2.shape == (1, 3, 16, 24), y2.shape
    np.testing.assert_array_equal(np.asarray(y2), np.asarray(_ref(x2, 2)))

    # Path A, bf16 fast path (single native-bf16 selector matmul)
    x3 = jax.random.normal(k3, (2, 4, 16, 16), dtype=jnp.float32).astype(jnp.bfloat16)
    y3 = jax.block_until_ready(up2(x3))
    np.testing.assert_array_equal(np.asarray(y3).astype(np.float32),
                                  np.asarray(_ref(x3, 2)).astype(np.float32))

    # Path A with lane padding (Hout*Wout = 240 -> padded to 256 columns)
    x4 = jax.random.normal(k4, (1, 3, 6, 10), dtype=jnp.float32)
    y4 = jax.block_until_ready(up2(x4))
    assert y4.shape == (1, 3, 12, 20), y4.shape
    np.testing.assert_array_equal(np.asarray(y4), np.asarray(_ref(x4, 2)))

    # Path B (separable, channel-batched fallback), f32 and bf16
    x5 = jax.random.normal(k5, (1, 4, 40, 40), dtype=jnp.float32)
    y5 = jax.block_until_ready(up2(x5))
    assert y5.shape == (1, 4, 80, 80), y5.shape
    np.testing.assert_array_equal(np.asarray(y5), np.asarray(_ref(x5, 2)))

    x6 = x5.astype(jnp.bfloat16)
    y6 = jax.block_until_ready(up2(x6))
    np.testing.assert_array_equal(np.asarray(y6).astype(np.float32),
                                  np.asarray(_ref(x6, 2)).astype(np.float32))

    print("KERNEL_OK")
</pallas_src>

<mosaic_0001>
module attributes {stable_mosaic.version = 11 : i64} {
  func.func @_flat_kernel(%arg0: i32, %arg1: memref<8x256xf32, #tpu.memory_space<vmem>>, %arg2: memref<256x1024xbf16, #tpu.memory_space<vmem>>, %arg3: memref<8x1024xf32, #tpu.memory_space<vmem>>) attributes {dimension_semantics = [#tpu.dimension_semantics<parallel>], iteration_bounds = array<i64: 1>, scalar_prefetch = 0 : i64, scratch_operands = 0 : i64, tpu.core_type = #tpu.core_type<tc>, window_params = [{transform_indices = @transform_0, window_bounds = array<i64: 8, 256>}, {pipeline_mode = #tpu.pipeline_mode<synchronous>, transform_indices = @transform_1, window_bounds = array<i64: 256, 1024>}, {transform_indices = @transform_2, window_bounds = array<i64: 8, 1024>}]} {
    %c0 = arith.constant 0 : index
    %c0_0 = arith.constant 0 : index
    %0 = vector.load %arg2[%c0, %c0_0] : memref<256x1024xbf16, #tpu.memory_space<vmem>>, vector<256x1024xbf16>
    %c0_1 = arith.constant 0 : index
    %c0_2 = arith.constant 0 : index
    %1 = vector.load %arg1[%c0_1, %c0_2] : memref<8x256xf32, #tpu.memory_space<vmem>>, vector<8x256xf32>
    %2 = tpu.bitcast %1 : vector<8x256xf32> -> vector<8x256xi32>
    %c-65536_i32 = arith.constant -65536 : i32
    %3 = vector.broadcast %c-65536_i32 : i32 to vector<8x256xi32>
    %4 = arith.andi %2, %3 : vector<8x256xi32>
    %5 = tpu.bitcast %4 : vector<8x256xi32> -> vector<8x256xf32>
    %6 = arith.subf %1, %5 : vector<8x256xf32>
    %7 = tpu.bitcast %6 : vector<8x256xf32> -> vector<8x256xi32>
    %c-65536_i32_3 = arith.constant -65536 : i32
    %8 = vector.broadcast %c-65536_i32_3 : i32 to vector<8x256xi32>
    %9 = arith.andi %7, %8 : vector<8x256xi32>
    %10 = tpu.bitcast %9 : vector<8x256xi32> -> vector<8x256xf32>
    %11 = arith.subf %6, %10 : vector<8x256xf32>
    %12 = arith.truncf %5 : vector<8x256xf32> to vector<8x256xbf16>
    %13 = arith.truncf %10 : vector<8x256xf32> to vector<8x256xbf16>
    %14 = arith.truncf %11 : vector<8x256xf32> to vector<8x256xbf16>
    %cst = arith.constant dense<0.000000e+00> : vector<8x1024xf32>
    %15 = tpu.matmul %12, %0, %cst {dimension_numbers = #tpu.dot_dimension_numbers<[1], [0], [0], [1], [0, 0, 1, 1], [], []>} : vector<8x256xbf16>, vector<256x1024xbf16>, vector<8x1024xf32> -> vector<8x1024xf32>
    %cst_4 = arith.constant dense<0.000000e+00> : vector<8x1024xf32>
    %16 = tpu.matmul %13, %0, %cst_4 {dimension_numbers = #tpu.dot_dimension_numbers<[1], [0], [0], [1], [0, 0, 1, 1], [], []>} : vector<8x256xbf16>, vector<256x1024xbf16>, vector<8x1024xf32> -> vector<8x1024xf32>
    %17 = arith.addf %15, %16 : vector<8x1024xf32>
    %cst_5 = arith.constant dense<0.000000e+00> : vector<8x1024xf32>
    %18 = tpu.matmul %14, %0, %cst_5 {dimension_numbers = #tpu.dot_dimension_numbers<[1], [0], [0], [1], [0, 0, 1, 1], [], []>} : vector<8x256xbf16>, vector<256x1024xbf16>, vector<8x1024xf32> -> vector<8x1024xf32>
    %19 = arith.addf %17, %18 : vector<8x1024xf32>
    %c0_6 = arith.constant 0 : index
    %c0_7 = arith.constant 0 : index
    %20 = vector.load %arg3[%c0_6, %c0_7] : memref<8x1024xf32, #tpu.memory_space<vmem>>, vector<8x1024xf32>
    tpu.vector_store %arg3[%c0_6, %c0_7], %19 {strides = array<i32>} : memref<8x1024xf32, #tpu.memory_space<vmem>>, vector<8x1024xf32>,
    return
  }
  func.func @transform_0(%arg0: i32) -> (i32, i32) {
    %c0_i32 = arith.constant 0 : i32
    %c0_i32_0 = arith.constant 0 : i32
    return %arg0, %c0_i32 : i32, i32
  }
  func.func @transform_1(%arg0: i32) -> (i32, i32) {
    %c0_i32 = arith.constant 0 : i32
    %c0_i32_0 = arith.constant 0 : i32
    %c0_i32_1 = arith.constant 0 : i32
    return %c0_i32, %c0_i32_0 : i32, i32
  }
  func.func @transform_2(%arg0: i32) -> (i32, i32) {
    %c0_i32 = arith.constant 0 : i32
    %c0_i32_0 = arith.constant 0 : i32
    return %arg0, %c0_i32 : i32, i32
  }
}

</mosaic_0001>

<bundles_post_ra>
// kernel: tpu_custom_call.1
= control target key start
LH: loop header
LB: loop body
LE: loop exit
PB: predicated region body
PF: predicated region fallthrough
CT: control target
= control target key end

     0   :  { %7 = vsyncpa [#allocation3], 0  ;;  %s2358_s0 = inlined_call_operand.hbm [shape: f32[8,256], index: 0, kind: input, shape index: {}]   ;;  %s2359_s1 = inlined_call_operand.hbm [shape: bf16[256,1024], index: 1, kind: input, shape index: {}]   ;;  %s2360_s2 = inlined_call_operand.hbm [shape: f32[8,1024], index: 2, kind: output, shape index: {}]  }
   0x1   :  { %8 = vsyncpa [#allocation6], 0 }
   0x2   :  { %9 = vsyncpa [#allocation4], 0  ;;  %s1591_s9 = smov [#allocation2]   ;;  %s1592_s11 = smov [#allocation5]  }
   0x3   :  { %s16_s10 = sshll.u32 %s1591_s9, 4  ;;  %s25_s12 = sshll.u32 %s1592_s11, 4  ;;  %s17_s10 = int_to_ptr.vmem [resolvable:$true] %s16_s10  ;;  %s1611_s12 = int_to_ptr.vmem [resolvable:$true] %s25_s12 }
   0x4   :  { %s1519_s15 = scalar_lea.hbm %s2358_s0, 256 }
   0x5   :  { %p1520_p0 = scmp.ne.s32.totalorder %s2358_s0, %s1519_s15  ;;  %p1523_p1 = scmp.lt.u32.totalorder %s1519_s15, %s2358_s0 }
   0x7   :  { %p1525_p2 = pnand %p1523_p1, %p1520_p0 }
   0x9   :  { %1528 = shalt.err (!%p1525_p2)
}
   0xa   :  { %s1529_s20 = scalar_lea.vmem %s17_s10, 256  ;;  %p1534_p4 = scmp.lt.s32.totalorder %s17_s10, %s17_s10 }
   0xb   :  { %p1530_p3 = scmp.ne.s32.totalorder %s17_s10, %s1529_s20  ;;  %p1535_p5 = scmp.lt.s32.totalorder %s1529_s20, %s1529_s20 }
   0xd   :  { %p1536_p6 = por %p1535_p5, %p1534_p4 }
   0xf   :  { %p1537_p7 = pnand %p1536_p6, %p1530_p3 }
  0x11   :  { %1540 = shalt.err (!%p1537_p7)
}
  0x12   :  { %19 = dma.hbm_to_vmem [thread:$0]  %s2358_s0, 256, %s17_s10, [#allocation3]  }
  0x13   :  { %s1541_s25 = scalar_lea.hbm %s2359_s1, 16384 }
  0x14   :  { %p1542_p8 = scmp.ne.s32.totalorder %s2359_s1, %s1541_s25  ;;  %p1545_p9 = scmp.lt.u32.totalorder %s1541_s25, %s2359_s1 }
  0x16   :  { %p1547_p10 = pnand %p1545_p9, %p1542_p8 }
  0x18   :  { %1550 = shalt.err (!%p1547_p10)
}
  0x19   :  { %s1551_s30 = scalar_lea.vmem %s1611_s12, 16384  ;;  %p1556_p12 = scmp.lt.s32.totalorder %s1611_s12, %s1611_s12 }
  0x1a   :  { %p1552_p11 = scmp.ne.s32.totalorder %s1611_s12, %s1551_s30  ;;  %p1557_p13 = scmp.lt.s32.totalorder %s1551_s30, %s1551_s30 }
  0x1c   :  { %p1558_p0 = por %p1557_p13, %p1556_p12 }
  0x1e   :  { %p1559_p1 = pnand %p1558_p0, %p1552_p11 }
  0x20   :  { %1562 = shalt.err (!%p1559_p1)
}
  0x21   :  { %s1593_s0 = smov 512   ;;  %s1594_s3 = smov 32  }
  0x22   :  { %31 = dma.hbm_to_vmem [thread:$0]  %s2359_s1, 16384, %s1611_s12, [#allocation6], %s1593_s0, %s1593_s0, %s1594_s3  }
  0x23   :  { %1585 = dma.done.wait [#allocation3], 256  }
  0x24   :  { %1586 = vsyncadd [#allocation3], 4294967040 }
  0x25   :  { %1587 = dma.done.wait [#allocation6], 16384  }
  0x26   :  { %1588 = vsyncadd [#allocation6], 4294950912  ;;  %v38_v0 = vld [vmem:[#allocation5] sm:$0xff]  ;;  %v39_v2 = vld [vmem:[#allocation5 + $0x8] sm:$0xff]  ;;  %s1595_s1 = smov [#allocation7]  }
  0x27   :  { %v42_v1 = vld [vmem:[#allocation5 + $0x20] sm:$0xff]  ;;  %v43_v4 = vld [vmem:[#allocation5 + $0x28] sm:$0xff]  ;;  %v167_v53 = vld [vmem:[#allocation2 + $0x8] sm:$0xff]  ;;  %s1344_s6 = sshll.u32 %s1595_s1, 4  ;;  %s1345_s6 = int_to_ptr.vmem [resolvable:$true] %s1344_s6 }
  0x28   :  { %v1642_v3 = vcombine.high %v38_v0, %v42_v1  ;;  %v1644_v5 = vcombine.low %v38_v0, %v42_v1  ;;  %v46_v6 = vld [vmem:[#allocation5 + $0x40] sm:$0xff]  ;;  %v1646_v8 = vcombine.high %v39_v2, %v43_v4  ;;  %v1648_v9 = vcombine.low %v39_v2, %v43_v4  ;;  %v47_v11 = vld [vmem:[#allocation5 + $0x48] sm:$0xff]  ;;  %s1563_s7 = scalar_lea.vmem %s1345_s6, 1024  ;;  %p1568_p3 = scmp.lt.s32.totalorder %s1345_s6, %s1345_s6 }
  0x29   :  { %v50_v7 = vld [vmem:[#allocation5 + $0x60] sm:$0xff]  ;;  %v51_v12 = vld [vmem:[#allocation5 + $0x68] sm:$0xff]  ;;  %v1716_v57 = vand.u32 4294901760, %v167_v53  ;;  %p1564_p2 = scmp.ne.s32.totalorder %s1345_s6, %s1563_s7  ;;  %p1569_p4 = scmp.lt.s32.totalorder %s1563_s7, %s1563_s7 }
  0x2a   :  { %v1650_v10 = vcombine.high %v46_v6, %v50_v7  ;;  %v54_v13 = vld [vmem:[#allocation5 + $0x80] sm:$0xff]  ;;  %830 = vmatprep.subr.bf16.mxu0 %v1642_v3  ;;  %v1653_v14 = vcombine.high %v47_v11, %v51_v12  ;;  %v55_v16 = vld [vmem:[#allocation5 + $0x88] sm:$0xff]  ;;  %871 = vmatprep.subr.bf16.mxu1 %v1646_v8  ;;  %v1657_v18 = vcombine.low %v46_v6, %v50_v7 }
  0x2b   :  { %v58_v15 = vld [vmem:[#allocation5 + $0xa0] sm:$0xff]  ;;  %v59_v17 = vld [vmem:[#allocation5 + $0xa8] sm:$0xff]  ;;  %831 = vmatpush1.bf16.msra.mxu0 %v1644_v5  ;;  %872 = vmatpush1.bf16.msra.mxu1 %v1648_v9  ;;  %v1661_v19 = vcombine.low %v47_v11, %v51_v12  ;;  %v1722_v61 = vsub.f32 %v167_v53, %v1716_v57  ;;  %p1570_p5 = por %p1569_p4, %p1568_p3 }
  0x2c   :  { %832 = vmatprep.subr.bf16.mxu0 %v1650_v10  ;;  %v1663_v20 = vcombine.high %v54_v13, %v58_v15  ;;  %873 = vmatprep.subr.bf16.mxu1 %v1653_v14  ;;  %v1666_v21 = vcombine.high %v55_v16, %v59_v17  ;;  %v62_v22 = vld [vmem:[#allocation5 + $0xc0] sm:$0xff]  ;;  %v63_v24 = vld [vmem:[#allocation5 + $0xc8] sm:$0xff]  ;;  %v1669_v26 = vcombine.low %v54_v13, %v58_v15 }
  0x2d   :  { %v66_v23 = vld [vmem:[#allocation5 + $0xe0] sm:$0xff]  ;;  %v67_v25 = vld [vmem:[#allocation5 + $0xe8] sm:$0xff]  ;;  %v1673_v27 = vcombine.low %v55_v16, %v59_v17  ;;  %2521 = vst [vmem:[#allocation11_spill] sm:$0xff] %v1722_v61  ;;  %v1734_v4 = vand.u32 4294901760, %v1722_v61  ;;  %p1571_p6 = pnand %p1570_p5, %p1564_p2 }
  0x2e   :  { %v1675_v28 = vcombine.high %v62_v22, %v66_v23  ;;  %v1678_v29 = vcombine.high %v63_v24, %v67_v25  ;;  %v70_v30 = vld [vmem:[#allocation5 + $0x100] sm:$0xff]  ;;  %v71_v32 = vld [vmem:[#allocation5 + $0x108] sm:$0xff]  ;;  %v1681_v34 = vcombine.low %v62_v22, %v66_v23  ;;  %v1685_v35 = vcombine.low %v63_v24, %v67_v25 }
  0x2f   :  { %833 = vmatpush1.bf16.msra.mxu0 %v1657_v18  ;;  %874 = vmatpush1.bf16.msra.mxu1 %v1661_v19  ;;  %v74_v31 = vld [vmem:[#allocation5 + $0x120] sm:$0xff]  ;;  %v75_v33 = vld [vmem:[#allocation5 + $0x128] sm:$0xff]  ;;  %2522 = vst [vmem:[#allocation12_spill] sm:$0xff] %v1734_v4  ;;  %v1741_v12 = vpack.c.bf16 %v1734_v4, %v1734_v4 }
  0x30   :  { %834 = vmatprep.subr.bf16.mxu0 %v1663_v20  ;;  %875 = vmatprep.subr.bf16.mxu1 %v1666_v21  ;;  %v1687_v36 = vcombine.high %v70_v30, %v74_v31  ;;  %v1690_v37 = vcombine.high %v71_v32, %v75_v33  ;;  %v78_v38 = vld [vmem:[#allocation5 + $0x140] sm:$0xff]  ;;  %v79_v40 = vld [vmem:[#allocation5 + $0x148] sm:$0xff]  ;;  %v1693_v42 = vcombine.low %v70_v30, %v74_v31 }
  0x31   :  { %v82_v39 = vld [vmem:[#allocation5 + $0x160] sm:$0xff]  ;;  %v83_v41 = vld [vmem:[#allocation5 + $0x168] sm:$0xff]  ;;  %v1697_v43 = vcombine.low %v71_v32, %v75_v33  ;;  %862 = vmatprep.mubr.bf16.mxu0 %v1741_v12  ;;  %903 = vmatprep.mubr.bf16.mxu1 %v1741_v12 }
  0x32   :  { %v1699_v44 = vcombine.high %v78_v38, %v82_v39  ;;  %v1702_v45 = vcombine.high %v79_v40, %v83_v41  ;;  %v86_v46 = vld [vmem:[#allocation5 + $0x180] sm:$0xff]  ;;  %v87_v48 = vld [vmem:[#allocation5 + $0x188] sm:$0xff]  ;;  %v1705_v50 = vcombine.low %v78_v38, %v82_v39  ;;  %v1709_v51 = vcombine.low %v79_v40, %v83_v41 }
  0x33   :  { %835 = vmatpush1.bf16.msra.mxu0 %v1669_v26  ;;  %876 = vmatpush1.bf16.msra.mxu1 %v1673_v27  ;;  %v90_v47 = vld [vmem:[#allocation5 + $0x1a0] sm:$0xff]  ;;  %v91_v49 = vld [vmem:[#allocation5 + $0x1a8] sm:$0xff] }
  0x34   :  { %836 = vmatprep.subr.bf16.mxu0 %v1675_v28  ;;  %877 = vmatprep.subr.bf16.mxu1 %v1678_v29  ;;  %v1711_v52 = vcombine.high %v86_v46, %v90_v47  ;;  %v1714_v54 = vcombine.high %v87_v48, %v91_v49  ;;  %v94_v55 = vld [vmem:[#allocation5 + $0x1c0] sm:$0xff]  ;;  %v95_v58 = vld [vmem:[#allocation5 + $0x1c8] sm:$0xff]  ;;  %v1719_v60 = vcombine.low %v86_v46, %v90_v47 }
  0x35   :  { %v98_v56 = vld [vmem:[#allocation5 + $0x1e0] sm:$0xff]  ;;  %v99_v59 = vld [vmem:[#allocation5 + $0x1e8] sm:$0xff]  ;;  %v1726_v62 = vcombine.low %v87_v48, %v91_v49 }
  0x36   :  { %v1728_v63 = vcombine.high %v94_v55, %v98_v56  ;;  %v1731_v0 = vcombine.high %v95_v58, %v99_v59  ;;  %v102_v1 = vld [vmem:[#allocation5 + $0x200] sm:$0xff]  ;;  %v103_v6 = vld [vmem:[#allocation5 + $0x208] sm:$0xff]  ;;  %v1737_v11 = vcombine.low %v94_v55, %v98_v56  ;;  %v1745_v13 = vcombine.low %v95_v58, %v99_v59 }
  0x37   :  { %837 = vmatpush1.bf16.msra.mxu0 %v1681_v34  ;;  %878 = vmatpush1.bf16.msra.mxu1 %v1685_v35  ;;  %v106_v2 = vld [vmem:[#allocation5 + $0x220] sm:$0xff]  ;;  %v107_v7 = vld [vmem:[#allocation5 + $0x228] sm:$0xff] }
  0x38   :  { %838 = vmatprep.subr.bf16.mxu0 %v1687_v36  ;;  %879 = vmatprep.subr.bf16.mxu1 %v1690_v37  ;;  %v1747_v15 = vcombine.high %v102_v1, %v106_v2  ;;  %v1750_v16 = vcombine.high %v103_v6, %v107_v7  ;;  %v110_v17 = vld [vmem:[#allocation5 + $0x240] sm:$0xff]  ;;  %v111_v23 = vld [vmem:[#allocation5 + $0x248] sm:$0xff]  ;;  %v1755_v25 = vcombine.low %v102_v1, %v106_v2 }
  0x39   :  { %v114_v22 = vld [vmem:[#allocation5 + $0x260] sm:$0xff]  ;;  %v115_v24 = vld [vmem:[#allocation5 + $0x268] sm:$0xff]  ;;  %v1759_v30 = vcombine.low %v103_v6, %v107_v7 }
  0x3a   :  { %v1761_v31 = vcombine.high %v110_v17, %v114_v22  ;;  %v1764_v32 = vcombine.high %v111_v23, %v115_v24  ;;  %v118_v33 = vld [vmem:[#allocation5 + $0x280] sm:$0xff]  ;;  %v119_v39 = vld [vmem:[#allocation5 + $0x288] sm:$0xff]  ;;  %v1767_v41 = vcombine.low %v110_v17, %v114_v22  ;;  %v1771_v46 = vcombine.low %v111_v23, %v115_v24 }
  0x3b   :  { %839 = vmatpush1.bf16.msra.mxu0 %v1693_v42  ;;  %880 = vmatpush1.bf16.msra.mxu1 %v1697_v43  ;;  %v122_v38 = vld [vmem:[#allocation5 + $0x2a0] sm:$0xff]  ;;  %v123_v40 = vld [vmem:[#allocation5 + $0x2a8] sm:$0xff] }
  0x3c   :  { %840 = vmatprep.subr.bf16.mxu0 %v1699_v44  ;;  %881 = vmatprep.subr.bf16.mxu1 %v1702_v45  ;;  %2523 = vst [vmem:[#allocation13_spill] sm:$0xff] %v1764_v32  ;;  %2524 = vst [vmem:[#allocation14_spill] sm:$0xff] %v1767_v41  ;;  %v1773_v47 = vcombine.high %v118_v33, %v122_v38  ;;  %v1776_v48 = vcombine.high %v119_v39, %v123_v40  ;;  %v126_v49 = vld [vmem:[#allocation5 + $0x2c0] sm:$0xff]  ;;  %v127_v55 = vld [vmem:[#allocation5 + $0x2c8] sm:$0xff] }
  0x3d   :  { %2525 = vst [vmem:[#allocation15_spill] sm:$0xff] %v1771_v46  ;;  %v130_v53 = vld [vmem:[#allocation5 + $0x2e0] sm:$0xff]  ;;  %v131_v56 = vld [vmem:[#allocation5 + $0x2e8] sm:$0xff]  ;;  %v1779_v58 = vcombine.low %v118_v33, %v122_v38  ;;  %v1783_v59 = vcombine.low %v119_v39, %v123_v40 }
  0x3e   :  { %2526 = vst [vmem:[#allocation16_spill] sm:$0xff] %v1773_v47  ;;  %2527 = vst [vmem:[#allocation17_spill] sm:$0xff] %v1776_v48  ;;  %v1785_v1 = vcombine.high %v126_v49, %v130_v53  ;;  %v1788_v2 = vcombine.high %v127_v55, %v131_v56  ;;  %v134_v6 = vld [vmem:[#allocation5 + $0x300] sm:$0xff]  ;;  %v135_v17 = vld [vmem:[#allocation5 + $0x308] sm:$0xff]  ;;  %v1791_v23 = vcombine.low %v126_v49, %v130_v53 }
  0x3f   :  { %841 = vmatpush1.bf16.msra.mxu0 %v1705_v50  ;;  %882 = vmatpush1.bf16.msra.mxu1 %v1709_v51  ;;  %2528 = vst [vmem:[#allocation18_spill] sm:$0xff] %v1779_v58  ;;  %2529 = vst [vmem:[#allocation19_spill] sm:$0xff] %v1783_v59  ;;  %v138_v7 = vld [vmem:[#allocation5 + $0x320] sm:$0xff]  ;;  %v139_v22 = vld [vmem:[#allocation5 + $0x328] sm:$0xff]  ;;  %v1795_v24 = vcombine.low %v127_v55, %v131_v56 }
  0x40   :  { %842 = vmatprep.subr.bf16.mxu0 %v1711_v52  ;;  %883 = vmatprep.subr.bf16.mxu1 %v1714_v54  ;;  %2530 = vst [vmem:[#allocation20_spill] sm:$0xff] %v1785_v1  ;;  %2531 = vst [vmem:[#allocation21_spill] sm:$0xff] %v1788_v2  ;;  %v1797_v33 = vcombine.high %v134_v6, %v138_v7  ;;  %v1800_v38 = vcombine.high %v135_v17, %v139_v22  ;;  %v142_v39 = vld [vmem:[#allocation5 + $0x340] sm:$0xff]  ;;  %v143_v61 = vld [vmem:[#allocation5 + $0x348] sm:$0xff] }
  0x41   :  { %2532 = vst [vmem:[#allocation22_spill] sm:$0xff] %v1791_v23  ;;  %2533 = vst [vmem:[#allocation23_spill] sm:$0xff] %v1795_v24  ;;  %v146_v40 = vld [vmem:[#allocation5 + $0x360] sm:$0xff]  ;;  %v147_v4 = vld [vmem:[#allocation5 + $0x368] sm:$0xff]  ;;  %v1803_v49 = vcombine.low %v134_v6, %v138_v7  ;;  %v1807_v55 = vcombine.low %v135_v17, %v139_v22 }
  0x42   :  { %2534 = vst [vmem:[#allocation24_spill] sm:$0xff] %v1797_v33  ;;  %2535 = vst [vmem:[#allocation25_spill] sm:$0xff] %v1800_v38  ;;  %v166_v53 = vld [vmem:[#allocation2] sm:$0xff]  ;;  %v1809_v56 = vcombine.high %v142_v39, %v146_v40  ;;  %v1817_v6 = vcombine.low %v142_v39, %v146_v40  ;;  %v1821_v7 = vcombine.low %v143_v61, %v147_v4 }
  0x43   :  { %843 = vmatpush1.bf16.msra.mxu0 %v1719_v60  ;;  %884 = vmatpush1.bf16.msra.mxu1 %v1726_v62  ;;  %2536 = vst [vmem:[#allocation26_spill] sm:$0xff] %v1803_v49  ;;  %2537 = vst [vmem:[#allocation27_spill] sm:$0xff] %v1807_v55 }
  0x44   :  { %844 = vmatprep.subr.bf16.mxu0 %v1728_v63  ;;  %885 = vmatprep.subr.bf16.mxu1 %v1731_v0  ;;  %2538 = vst [vmem:[#allocation28_spill] sm:$0xff] %v1809_v56  ;;  %2541 = vst [vmem:[#allocation31_spill] sm:$0xff] %v1817_v6 }
  0x45   :  { %2542 = vst [vmem:[#allocation32_spill] sm:$0xff] %v1821_v7 }
  0x47   :  { %845 = vmatpush1.bf16.msra.mxu0 %v1737_v11  ;;  %886 = vmatpush1.bf16.msra.mxu1 %v1745_v13 }
  0x48   :  { %846 = vmatprep.subr.bf16.mxu0 %v1747_v15  ;;  %887 = vmatprep.subr.bf16.mxu1 %v1750_v16 }
  0x4b   :  { %847 = vmatpush1.bf16.msra.mxu0 %v1755_v25  ;;  %888 = vmatpush1.bf16.msra.mxu1 %v1759_v30 }
  0x4c   :  { %848 = vmatprep.subr.bf16.mxu0 %v1761_v31  ;;  %889 = vmatprep.subr.bf16.mxu1 %v1764_v32 }
  0x4f   :  { %849 = vmatpush1.bf16.msra.mxu0 %v1767_v41  ;;  %890 = vmatpush1.bf16.msra.mxu1 %v1771_v46 }
  0x50   :  { %850 = vmatprep.subr.bf16.mxu0 %v1773_v47  ;;  %891 = vmatprep.subr.bf16.mxu1 %v1776_v48  ;;  %v155_v48 = vld [vmem:[#allocation5 + $0x3a8] sm:$0xff] }
  0x51   :  { %v163_v47 = vld [vmem:[#allocation5 + $0x3e8] sm:$0xff] }
  0x53   :  { %851 = vmatpush1.bf16.msra.mxu0 %v1779_v58  ;;  %892 = vmatpush1.bf16.msra.mxu1 %v1783_v59  ;;  %v154_v59 = vld [vmem:[#allocation5 + $0x3a0] sm:$0xff]  ;;  %v151_v58 = vld [vmem:[#allocation5 + $0x388] sm:$0xff] }
  0x54   :  { %852 = vmatprep.subr.bf16.mxu0 %v1785_v1  ;;  %893 = vmatprep.subr.bf16.mxu1 %v1788_v2  ;;  %v1812_v2 = vcombine.high %v143_v61, %v147_v4  ;;  %v150_v1 = vld [vmem:[#allocation5 + $0x380] sm:$0xff]  ;;  %v1826_v22 = vcombine.high %v151_v58, %v155_v48  ;;  %v1836_v61 = vcombine.low %v151_v58, %v155_v48 }
  0x55   :  { %v1823_v17 = vcombine.high %v150_v1, %v154_v59  ;;  %v1832_v39 = vcombine.low %v150_v1, %v154_v59 }
  0x56   :  { %2539 = vst [vmem:[#allocation29_spill] sm:$0xff] %v1812_v2  ;;  %2544 = vst [vmem:[#allocation34_spill] sm:$0xff] %v1826_v22 }
  0x57   :  { %853 = vmatpush1.bf16.msra.mxu0 %v1791_v23  ;;  %894 = vmatpush1.bf16.msra.mxu1 %v1795_v24  ;;  %v1814_v23 = vand.u32 4294901760, %v166_v53  ;;  %2543 = vst [vmem:[#allocation33_spill] sm:$0xff] %v1823_v17  ;;  %v159_v24 = vld [vmem:[#allocation5 + $0x3c8] sm:$0xff]  ;;  %2546 = vst [vmem:[#allocation36_spill] sm:$0xff] %v1832_v39 }
  0x58   :  { %854 = vmatprep.subr.bf16.mxu0 %v1797_v33  ;;  %895 = vmatprep.subr.bf16.mxu1 %v1800_v38  ;;  %v158_v38 = vld [vmem:[#allocation5 + $0x3c0] sm:$0xff]  ;;  %2547 = vst [vmem:[#allocation37_spill] sm:$0xff] %v1836_v61  ;;  %v1841_v40 = vcombine.high %v159_v24, %v163_v47  ;;  %v1851_v48 = vcombine.low %v159_v24, %v163_v47 }
  0x59   :  { %2540 = vst [vmem:[#allocation30_spill] sm:$0xff] %v1814_v23  ;;  %v162_v33 = vld [vmem:[#allocation5 + $0x3e0] sm:$0xff] }
  0x5a   :  { %v1838_v4 = vcombine.high %v158_v38, %v162_v33  ;;  %2549 = vst [vmem:[#allocation39_spill] sm:$0xff] %v1841_v40  ;;  %v1847_v59 = vcombine.low %v158_v38, %v162_v33  ;;  %2552 = vst [vmem:[#allocation42_spill] sm:$0xff] %v1851_v48  ;;  %v49_v33 = vld [vmem:[#allocation5 + $0x58] sm:$0xff] }
  0x5b   :  { %855 = vmatpush1.bf16.msra.mxu0 %v1803_v49  ;;  %896 = vmatpush1.bf16.msra.mxu1 %v1807_v55  ;;  %v1829_v49 = vsub.f32 %v166_v53, %v1814_v23  ;;  %v41_v53 = vld [vmem:[#allocation5 + $0x18] sm:$0xff] }
  0x5c   :  { %856 = vmatprep.subr.bf16.mxu0 %v1809_v56  ;;  %897 = vmatprep.subr.bf16.mxu1 %v1812_v2  ;;  %2548 = vst [vmem:[#allocation38_spill] sm:$0xff] %v1838_v4  ;;  %v40_v2 = vld [vmem:[#allocation5 + $0x10] sm:$0xff]  ;;  %v45_v23 = vld [vmem:[#allocation5 + $0x38] sm:$0xff]  ;;  %2551 = vst [vmem:[#allocation41_spill] sm:$0xff] %v1847_v59 }
  0x5d   :  { %2545 = vst [vmem:[#allocation35_spill] sm:$0xff] %v1829_v49  ;;  %v44_v56 = vld [vmem:[#allocation5 + $0x30] sm:$0xff]  ;;  %v1856_v1 = vcombine.high %v41_v53, %v45_v23  ;;  %v53_v38 = vld [vmem:[#allocation5 + $0x78] sm:$0xff]  ;;  %v1867_v47 = vcombine.low %v41_v53, %v45_v23 }
  0x5e   :  { %v1853_v58 = vcombine.high %v40_v2, %v44_v56  ;;  %v1881_v23 = vcombine.low %v49_v33, %v53_v38 }
  0x5f   :  { %857 = vmatpush1.bf16.msra.mxu0 %v1817_v6  ;;  %898 = vmatpush1.bf16.msra.mxu1 %v1821_v7  ;;  %v1844_v6 = vand.u32 4294901760, %v1829_v49  ;;  %2554 = vst [vmem:[#allocation44_spill] sm:$0xff] %v1856_v1  ;;  %2556 = vst [vmem:[#allocation46_spill] sm:$0xff] %v1867_v47 }
  0x60   :  { %858 = vmatprep.subr.bf16.mxu0 %v1823_v17  ;;  %899 = vmatprep.subr.bf16.mxu1 %v1826_v22  ;;  %2553 = vst [vmem:[#allocation43_spill] sm:$0xff] %v1853_v58  ;;  %v48_v22 = vld [vmem:[#allocation5 + $0x50] sm:$0xff]  ;;  %2560 = vst [vmem:[#allocation50_spill] sm:$0xff] %v1881_v23 }
  0x61   :  { %2550 = vst [vmem:[#allocation40_spill] sm:$0xff] %v1844_v6  ;;  %v52_v17 = vld [vmem:[#allocation5 + $0x70] sm:$0xff]  ;;  %v1860_v49 = vpack.c.bf16 %v1844_v6, %v1844_v6 }
  0x62   :  { %v1869_v24 = vcombine.high %v48_v22, %v52_v17  ;;  %v56_v6 = vld [vmem:[#allocation5 + $0x90] sm:$0xff] }
  0x63   :  { %859 = vmatpush1.bf16.msra.mxu0 %v1832_v39  ;;  %900 = vmatpush1.bf16.msra.mxu1 %v1836_v61  ;;  %v1863_v61 = vcombine.low %v40_v2, %v44_v56  ;;  %v57_v39 = vld [vmem:[#allocation5 + $0x98] sm:$0xff]  ;;  %v1877_v2 = vcombine.low %v48_v22, %v52_v17 }
  0x64   :  { %860 = vmatprep.subr.bf16.mxu0 %v1838_v4  ;;  %901 = vmatprep.subr.bf16.mxu1 %v1841_v40  ;;  %2557 = vst [vmem:[#allocation47_spill] sm:$0xff] %v1869_v24  ;;  %v1872_v40 = vcombine.high %v49_v33, %v53_v38  ;;  %v60_v4 = vld [vmem:[#allocation5 + $0xb0] sm:$0xff] }
  0x65   :  { %2555 = vst [vmem:[#allocation45_spill] sm:$0xff] %v1863_v61  ;;  %2559 = vst [vmem:[#allocation49_spill] sm:$0xff] %v1877_v2  ;;  %v1883_v56 = vcombine.high %v56_v6, %v60_v4  ;;  %v1891_v17 = vcombine.low %v56_v6, %v60_v4 }
  0x66   :  { %2558 = vst [vmem:[#allocation48_spill] sm:$0xff] %v1872_v40 }
  0x67   :  { %861 = vmatpush1.bf16.msra.mxu0 %v1847_v59  ;;  %902 = vmatpush1.bf16.msra.mxu1 %v1851_v48  ;;  %v61_v59 = vld [vmem:[#allocation5 + $0xb8] sm:$0xff]  ;;  %2561 = vst [vmem:[#allocation51_spill] sm:$0xff] %v1883_v56  ;;  %2563 = vst [vmem:[#allocation53_spill] sm:$0xff] %v1891_v17 }
  0x68   :  { %912 = vmatprep.subr.bf16.mxu0 %v1853_v58  ;;  %953 = vmatprep.subr.bf16.mxu1 %v1856_v1  ;;  %v1886_v53 = vcombine.high %v57_v39, %v61_v59  ;;  %v64_v1 = vld [vmem:[#allocation5 + $0xd0] sm:$0xff]  ;;  %v65_v48 = vld [vmem:[#allocation5 + $0xd8] sm:$0xff]  ;;  %v1895_v22 = vcombine.low %v57_v39, %v61_v59 }
  0x69   :  { %v68_v58 = vld [vmem:[#allocation5 + $0xf0] sm:$0xff] }
  0x6a   :  { %863 = vmatmul.mubr.bf16.vlgmr.msra.gmra.mrb[0].mxu0 %v1860_v49  ;;  %904 = vmatmul.mubr.bf16.vlgmr.msra.gmra.mrb[0].mxu1 %v1860_v49  ;;  %2562 = vst [vmem:[#allocation52_spill] sm:$0xff] %v1886_v53  ;;  %2564 = vst [vmem:[#allocation54_spill] sm:$0xff] %v1895_v22  ;;  %v1897_v33 = vcombine.high %v64_v1, %v68_v58  ;;  %v1903_v6 = vcombine.low %v64_v1, %v68_v58 }
  0x6b   :  { %913 = vmatpush1.bf16.msra.mxu0 %v1863_v61  ;;  %954 = vmatpush1.bf16.msra.mxu1 %v1867_v47  ;;  %v69_v61 = vld [vmem:[#allocation5 + $0xf8] sm:$0xff] }
  0x6c   :  { %914 = vmatprep.subr.bf16.mxu0 %v1869_v24  ;;  %955 = vmatprep.subr.bf16.mxu1 %v1872_v40  ;;  %2565 = vst [vmem:[#allocation55_spill] sm:$0xff] %v1897_v33  ;;  %v1900_v38 = vcombine.high %v65_v48, %v69_v61  ;;  %v72_v40 = vld [vmem:[#allocation5 + $0x110] sm:$0xff]  ;;  %v73_v47 = vld [vmem:[#allocation5 + $0x118] sm:$0xff]  ;;  %2567 = vst [vmem:[#allocation57_spill] sm:$0xff] %v1903_v6  ;;  %v1907_v39 = vcombine.low %v65_v48, %v69_v61 }
  0x6d   :  { %944 = vmatprep.mubr.bf16.mxu0 %v1741_v12  ;;  %985 = vmatprep.mubr.bf16.mxu1 %v1741_v12  ;;  %v76_v24 = vld [vmem:[#allocation5 + $0x130] sm:$0xff]  ;;  %v77_v12 = vld [vmem:[#allocation5 + $0x138] sm:$0xff] }
  0x6e   :  { %2566 = vst [vmem:[#allocation56_spill] sm:$0xff] %v1900_v38  ;;  %2568 = vst [vmem:[#allocation58_spill] sm:$0xff] %v1907_v39  ;;  %v1909_v4 = vcombine.high %v72_v40, %v76_v24  ;;  %v1912_v59 = vcombine.high %v73_v47, %v77_v12  ;;  %v1915_v58 = vcombine.low %v72_v40, %v76_v24 }
  0x6f   :  { %915 = vmatpush1.bf16.msra.mxu0 %v1877_v2  ;;  %956 = vmatpush1.bf16.msra.mxu1 %v1881_v23  ;;  %v81_v23 = vld [vmem:[#allocation5 + $0x158] sm:$0xff]  ;;  %v1919_v61 = vcombine.low %v73_v47, %v77_v12 }
  0x70   :  { %916 = vmatprep.subr.bf16.mxu0 %v1883_v56  ;;  %957 = vmatprep.subr.bf16.mxu1 %v1886_v53  ;;  %2569 = vst [vmem:[#allocation59_spill] sm:$0xff] %v1909_v4  ;;  %2570 = vst [vmem:[#allocation60_spill] sm:$0xff] %v1912_v59  ;;  %v80_v53 = vld [vmem:[#allocation5 + $0x150] sm:$0xff]  ;;  %v85_v2 = vld [vmem:[#allocation5 + $0x178] sm:$0xff] }
  0x71   :  { %v84_v56 = vld [vmem:[#allocation5 + $0x170] sm:$0xff]  ;;  %2571 = vst [vmem:[#allocation61_spill] sm:$0xff] %v1915_v58  ;;  %2572 = vst [vmem:[#allocation62_spill] sm:$0xff] %v1919_v61  ;;  %v1924_v1 = vcombine.high %v81_v23, %v85_v2  ;;  %v1931_v47 = vcombine.low %v81_v23, %v85_v2 }
  0x72   :  { %v1921_v48 = vcombine.high %v80_v53, %v84_v56  ;;  %v1927_v40 = vcombine.low %v80_v53, %v84_v56 }
  0x73   :  { %917 = vmatpush1.bf16.msra.mxu0 %v1891_v17  ;;  %958 = vmatpush1.bf16.msra.mxu1 %v1895_v22  ;;  %2574 = vst [vmem:[#allocation64_spill] sm:$0xff] %v1924_v1  ;;  %v89_v22 = vld [vmem:[#allocation5 + $0x198] sm:$0xff]  ;;  %2576 = vst [vmem:[#allocation66_spill] sm:$0xff] %v1931_v47 }
  0x74   :  { %918 = vmatprep.subr.bf16.mxu0 %v1897_v33  ;;  %959 = vmatprep.subr.bf16.mxu1 %v1900_v38  ;;  %2573 = vst [vmem:[#allocation63_spill] sm:$0xff] %v1921_v48  ;;  %v88_v38 = vld [vmem:[#allocation5 + $0x190] sm:$0xff]  ;;  %v93_v17 = vld [vmem:[#allocation5 + $0x1b8] sm:$0xff]  ;;  %2575 = vst [vmem:[#allocation65_spill] sm:$0xff] %v1927_v40 }
  0x75   :  { %v92_v33 = vld [vmem:[#allocation5 + $0x1b0] sm:$0xff]  ;;  %v1936_v12 = vcombine.high %v89_v22, %v93_v17  ;;  %v1943_v2 = vcombine.low %v89_v22, %v93_v17 }
  0x76   :  { %v1933_v24 = vcombine.high %v88_v38, %v92_v33  ;;  %v1939_v56 = vcombine.low %v88_v38, %v92_v33 }
  0x77   :  { %919 = vmatpush1.bf16.msra.mxu0 %v1903_v6  ;;  %960 = vmatpush1.bf16.msra.mxu1 %v1907_v39  ;;  %2578 = vst [vmem:[#allocation68_spill] sm:$0xff] %v1936_v12  ;;  %v97_v39 = vld [vmem:[#allocation5 + $0x1d8] sm:$0xff]  ;;  %2580 = vst [vmem:[#allocation70_spill] sm:$0xff] %v1943_v2 }
  0x78   :  { %920 = vmatprep.subr.bf16.mxu0 %v1909_v4  ;;  %961 = vmatprep.subr.bf16.mxu1 %v1912_v59  ;;  %2577 = vst [vmem:[#allocation67_spill] sm:$0xff] %v1933_v24  ;;  %v96_v59 = vld [vmem:[#allocation5 + $0x1d0] sm:$0xff]  ;;  %v101_v6 = vld [vmem:[#allocation5 + $0x1f8] sm:$0xff]  ;;  %2579 = vst [vmem:[#allocation69_spill] sm:$0xff] %v1939_v56 }
  0x79   :  { %v100_v4 = vld [vmem:[#allocation5 + $0x1f0] sm:$0xff]  ;;  %v1948_v53 = vcombine.high %v97_v39, %v101_v6  ;;  %v1955_v17 = vcombine.low %v97_v39, %v101_v6 }
  0x7a   :  { %v1945_v23 = vcombine.high %v96_v59, %v100_v4  ;;  %v1951_v33 = vcombine.low %v96_v59, %v100_v4 }
  0x7b   :  { %921 = vmatpush1.bf16.msra.mxu0 %v1915_v58  ;;  %962 = vmatpush1.bf16.msra.mxu1 %v1919_v61  ;;  %2582 = vst [vmem:[#allocation72_spill] sm:$0xff] %v1948_v53  ;;  %v105_v61 = vld [vmem:[#allocation5 + $0x218] sm:$0xff]  ;;  %2584 = vst [vmem:[#allocation74_spill] sm:$0xff] %v1955_v17 }
  0x7c   :  { %922 = vmatprep.subr.bf16.mxu0 %v1921_v48  ;;  %963 = vmatprep.subr.bf16.mxu1 %v1924_v1  ;;  %2581 = vst [vmem:[#allocation71_spill] sm:$0xff] %v1945_v23  ;;  %v104_v1 = vld [vmem:[#allocation5 + $0x210] sm:$0xff]  ;;  %v109_v58 = vld [vmem:[#allocation5 + $0x238] sm:$0xff]  ;;  %2583 = vst [vmem:[#allocation73_spill] sm:$0xff] %v1951_v33 }
  0x7d   :  { %v108_v48 = vld [vmem:[#allocation5 + $0x230] sm:$0xff]  ;;  %v1960_v38 = vcombine.high %v105_v61, %v109_v58  ;;  %v1967_v6 = vcombine.low %v105_v61, %v109_v58 }
  0x7e   :  { %v1957_v22 = vcombine.high %v104_v1, %v108_v48  ;;  %v1963_v4 = vcombine.low %v104_v1, %v108_v48 }
  0x7f   :  { %923 = vmatpush1.bf16.msra.mxu0 %v1927_v40  ;;  %964 = vmatpush1.bf16.msra.mxu1 %v1931_v47  ;;  %2586 = vst [vmem:[#allocation76_spill] sm:$0xff] %v1960_v38  ;;  %v113_v47 = vld [vmem:[#allocation5 + $0x258] sm:$0xff]  ;;  %2588 = vst [vmem:[#allocation78_spill] sm:$0xff] %v1967_v6 }
  0x80   :  { %924 = vmatprep.subr.bf16.mxu0 %v1933_v24  ;;  %965 = vmatprep.subr.bf16.mxu1 %v1936_v12  ;;  %2585 = vst [vmem:[#allocation75_spill] sm:$0xff] %v1957_v22  ;;  %v112_v12 = vld [vmem:[#allocation5 + $0x250] sm:$0xff]  ;;  %v117_v40 = vld [vmem:[#allocation5 + $0x278] sm:$0xff]  ;;  %2587 = vst [vmem:[#allocation77_spill] sm:$0xff] %v1963_v4 }
  0x81   :  { %v116_v24 = vld [vmem:[#allocation5 + $0x270] sm:$0xff]  ;;  %v1972_v59 = vcombine.high %v113_v47, %v117_v40  ;;  %v1979_v58 = vcombine.low %v113_v47, %v117_v40 }
  0x82   :  { %v1969_v39 = vcombine.high %v112_v12, %v116_v24  ;;  %v1975_v48 = vcombine.low %v112_v12, %v116_v24 }
  0x83   :  { %925 = vmatpush1.bf16.msra.mxu0 %v1939_v56  ;;  %966 = vmatpush1.bf16.msra.mxu1 %v1943_v2  ;;  %2590 = vst [vmem:[#allocation80_spill] sm:$0xff] %v1972_v59  ;;  %v121_v2 = vld [vmem:[#allocation5 + $0x298] sm:$0xff]  ;;  %2592 = vst [vmem:[#allocation82_spill] sm:$0xff] %v1979_v58 }
  0x84   :  { %926 = vmatprep.subr.bf16.mxu0 %v1945_v23  ;;  %967 = vmatprep.subr.bf16.mxu1 %v1948_v53  ;;  %2589 = vst [vmem:[#allocation79_spill] sm:$0xff] %v1969_v39  ;;  %v120_v53 = vld [vmem:[#allocation5 + $0x290] sm:$0xff]  ;;  %v125_v56 = vld [vmem:[#allocation5 + $0x2b8] sm:$0xff]  ;;  %2591 = vst [vmem:[#allocation81_spill] sm:$0xff] %v1975_v48 }
  0x85   :  { %v124_v23 = vld [vmem:[#allocation5 + $0x2b0] sm:$0xff]  ;;  %v1984_v1 = vcombine.high %v121_v2, %v125_v56  ;;  %v1991_v40 = vcombine.low %v121_v2, %v125_v56 }
  0x86   :  { %v1981_v61 = vcombine.high %v120_v53, %v124_v23  ;;  %v1987_v24 = vcombine.low %v120_v53, %v124_v23 }
  0x87   :  { %927 = vmatpush1.bf16.msra.mxu0 %v1951_v33  ;;  %968 = vmatpush1.bf16.msra.mxu1 %v1955_v17  ;;  %2594 = vst [vmem:[#allocation84_spill] sm:$0xff] %v1984_v1  ;;  %v129_v17 = vld [vmem:[#allocation5 + $0x2d8] sm:$0xff]  ;;  %2596 = vst [vmem:[#allocation86_spill] sm:$0xff] %v1991_v40 }
  0x88   :  { %928 = vmatprep.subr.bf16.mxu0 %v1957_v22  ;;  %969 = vmatprep.subr.bf16.mxu1 %v1960_v38  ;;  %2593 = vst [vmem:[#allocation83_spill] sm:$0xff] %v1981_v61  ;;  %v128_v38 = vld [vmem:[#allocation5 + $0x2d0] sm:$0xff]  ;;  %v133_v33 = vld [vmem:[#allocation5 + $0x2f8] sm:$0xff]  ;;  %2595 = vst [vmem:[#allocation85_spill] sm:$0xff] %v1987_v24 }
  0x89   :  { %v132_v22 = vld [vmem:[#allocation5 + $0x2f0] sm:$0xff]  ;;  %v1996_v12 = vcombine.high %v129_v17, %v133_v33  ;;  %v2003_v56 = vcombine.low %v129_v17, %v133_v33 }
  0x8a   :  { %v1993_v47 = vcombine.high %v128_v38, %v132_v22  ;;  %v1999_v23 = vcombine.low %v128_v38, %v132_v22 }
  0x8b   :  { %929 = vmatpush1.bf16.msra.mxu0 %v1963_v4  ;;  %970 = vmatpush1.bf16.msra.mxu1 %v1967_v6  ;;  %2598 = vst [vmem:[#allocation88_spill] sm:$0xff] %v1996_v12  ;;  %v137_v6 = vld [vmem:[#allocation5 + $0x318] sm:$0xff]  ;;  %2600 = vst [vmem:[#allocation90_spill] sm:$0xff] %v2003_v56 }
  0x8c   :  { %930 = vmatprep.subr.bf16.mxu0 %v1969_v39  ;;  %971 = vmatprep.subr.bf16.mxu1 %v1972_v59  ;;  %2597 = vst [vmem:[#allocation87_spill] sm:$0xff] %v1993_v47  ;;  %v136_v59 = vld [vmem:[#allocation5 + $0x310] sm:$0xff]  ;;  %v141_v4 = vld [vmem:[#allocation5 + $0x338] sm:$0xff]  ;;  %2599 = vst [vmem:[#allocation89_spill] sm:$0xff] %v1999_v23 }
  0x8d   :  { %v140_v39 = vld [vmem:[#allocation5 + $0x330] sm:$0xff]  ;;  %v2008_v53 = vcombine.high %v137_v6, %v141_v4  ;;  %v2015_v33 = vcombine.low %v137_v6, %v141_v4 }
  0x8e   :  { %v2005_v2 = vcombine.high %v136_v59, %v140_v39  ;;  %v2011_v22 = vcombine.low %v136_v59, %v140_v39 }
  0x8f   :  { %931 = vmatpush1.bf16.msra.mxu0 %v1975_v48  ;;  %972 = vmatpush1.bf16.msra.mxu1 %v1979_v58  ;;  %2602 = vst [vmem:[#allocation92_spill] sm:$0xff] %v2008_v53  ;;  %v145_v58 = vld [vmem:[#allocation5 + $0x358] sm:$0xff]  ;;  %2604 = vst [vmem:[#allocation94_spill] sm:$0xff] %v2015_v33 }
  0x90   :  { %932 = vmatprep.subr.bf16.mxu0 %v1981_v61  ;;  %973 = vmatprep.subr.bf16.mxu1 %v1984_v1  ;;  %2601 = vst [vmem:[#allocation91_spill] sm:$0xff] %v2005_v2  ;;  %v144_v1 = vld [vmem:[#allocation5 + $0x350] sm:$0xff]  ;;  %v149_v48 = vld [vmem:[#allocation5 + $0x378] sm:$0xff]  ;;  %2603 = vst [vmem:[#allocation93_spill] sm:$0xff] %v2011_v22 }
  0x91   :  { %v148_v61 = vld [vmem:[#allocation5 + $0x370] sm:$0xff]  ;;  %v2020_v38 = vcombine.high %v145_v58, %v149_v48  ;;  %v2027_v4 = vcombine.low %v145_v58, %v149_v48 }
  0x92   :  { %v2017_v17 = vcombine.high %v144_v1, %v148_v61  ;;  %v2023_v39 = vcombine.low %v144_v1, %v148_v61 }
  0x93   :  { %933 = vmatpush1.bf16.msra.mxu0 %v1987_v24  ;;  %974 = vmatpush1.bf16.msra.mxu1 %v1991_v40  ;;  %2606 = vst [vmem:[#allocation96_spill] sm:$0xff] %v2020_v38  ;;  %v153_v40 = vld [vmem:[#allocation5 + $0x398] sm:$0xff] }
  0x94   :  { %934 = vmatprep.subr.bf16.mxu0 %v1993_v47  ;;  %975 = vmatprep.subr.bf16.mxu1 %v1996_v12  ;;  %2605 = vst [vmem:[#allocation95_spill] sm:$0xff] %v2017_v17  ;;  %v152_v12 = vld [vmem:[#allocation5 + $0x390] sm:$0xff]  ;;  %v157_v24 = vld [vmem:[#allocation5 + $0x3b8] sm:$0xff] }
  0x95   :  { %v156_v47 = vld [vmem:[#allocation5 + $0x3b0] sm:$0xff]  ;;  %v2032_v59 = vcombine.high %v153_v40, %v157_v24  ;;  %v2039_v48 = vcombine.low %v153_v40, %v157_v24  ;;  %v2060_v24 = vpack.c.bf16 %v1716_v57, %v1716_v57  ;;  %v2608_v57 = vld [vmem:[#allocation16_spill] sm:$0xff]  ;;  %v2610_v40 = vld [vmem:[#allocation18_spill] sm:$0xff] }
  0x96   :  { %v2029_v6 = vcombine.high %v152_v12, %v156_v47  ;;  %v2035_v61 = vcombine.low %v152_v12, %v156_v47  ;;  %v2611_v12 = vld [vmem:[#allocation19_spill] sm:$0xff] }
  0x97   :  { %935 = vmatpush1.bf16.msra.mxu0 %v1999_v23  ;;  %976 = vmatpush1.bf16.msra.mxu1 %v2003_v56  ;;  %2607 = vst [vmem:[#allocation97_spill] sm:$0xff] %v2032_v59  ;;  %v161_v56 = vld [vmem:[#allocation5 + $0x3d8] sm:$0xff] }
  0x98   :  { %936 = vmatprep.subr.bf16.mxu0 %v2005_v2  ;;  %977 = vmatprep.subr.bf16.mxu1 %v2008_v53  ;;  %v160_v53 = vld [vmem:[#allocation5 + $0x3d0] sm:$0xff]  ;;  %v165_v23 = vld [vmem:[#allocation5 + $0x3f8] sm:$0xff] }
  0x99   :  { %v164_v2 = vld [vmem:[#allocation5 + $0x3f0] sm:$0xff]  ;;  %v2044_v1 = vcombine.high %v161_v56, %v165_v23  ;;  %v2051_v47 = vcombine.low %v161_v56, %v165_v23  ;;  %v2612_v23 = vld [vmem:[#allocation20_spill] sm:$0xff] }
  0x9a   :  { %v2041_v58 = vcombine.high %v160_v53, %v164_v2  ;;  %v2613_v56 = vld [vmem:[#allocation21_spill] sm:$0xff] }
  0x9b   :  { %937 = vmatpush1.bf16.msra.mxu0 %v2011_v22  ;;  %978 = vmatpush1.bf16.msra.mxu1 %v2015_v33 }
  0x9c   :  { %938 = vmatprep.subr.bf16.mxu0 %v2017_v17  ;;  %979 = vmatprep.subr.bf16.mxu1 %v2020_v38  ;;  %v2047_v38 = vcombine.low %v160_v53, %v164_v2  ;;  %v2614_v2 = vld [vmem:[#allocation22_spill] sm:$0xff]  ;;  %v2615_v53 = vld [vmem:[#allocation23_spill] sm:$0xff] }
  0x9f   :  { %939 = vmatpush1.bf16.msra.mxu0 %v2023_v39  ;;  %980 = vmatpush1.bf16.msra.mxu1 %v2027_v4 }
  0xa0   :  { %940 = vmatprep.subr.bf16.mxu0 %v2029_v6  ;;  %981 = vmatprep.subr.bf16.mxu1 %v2032_v59 }
  0xa3   :  { %941 = vmatpush1.bf16.msra.mxu0 %v2035_v61  ;;  %982 = vmatpush1.bf16.msra.mxu1 %v2039_v48 }
  0xa4   :  { %942 = vmatprep.subr.bf16.mxu0 %v2041_v58  ;;  %983 = vmatprep.subr.bf16.mxu1 %v2044_v1 }
  0xa7   :  { %943 = vmatpush1.bf16.msra.mxu0 %v2047_v38  ;;  %984 = vmatpush1.bf16.msra.mxu1 %v2051_v47 }
  0xa8   :  { %994 = vmatprep.subr.bf16.mxu0 %v1642_v3  ;;  %1035 = vmatprep.subr.bf16.mxu1 %v1646_v8 }
  0xaa   :  { %945 = vmatmul.mubr.bf16.vlgmr.msra.gmra.mrb[4].mxu0 %v1860_v49  ;;  %986 = vmatmul.mubr.bf16.vlgmr.msra.gmra.mrb[4].mxu1 %v1860_v49  ;;  %v2609_v49 = vld [vmem:[#allocation17_spill] sm:$0xff] }
  0xab   :  { %995 = vmatpush1.bf16.msra.mxu0 %v1644_v5  ;;  %1036 = vmatpush1.bf16.msra.mxu1 %v1648_v9 }
  0xac   :  { %996 = vmatprep.subr.bf16.mxu0 %v1650_v10  ;;  %1037 = vmatprep.subr.bf16.mxu1 %v1653_v14 }
  0xad   :  { %1026 = vmatprep.mubr.bf16.mxu0 %v2060_v24  ;;  %1067 = vmatprep.mubr.bf16.mxu1 %v2060_v24 }
  0xaf   :  { %997 = vmatpush1.bf16.msra.mxu0 %v1657_v18  ;;  %1038 = vmatpush1.bf16.msra.mxu1 %v1661_v19 }
  0xb0   :  { %998 = vmatprep.subr.bf16.mxu0 %v1663_v20  ;;  %1039 = vmatprep.subr.bf16.mxu1 %v1666_v21 }
  0xb3   :  { %999 = vmatpush1.bf16.msra.mxu0 %v1669_v26  ;;  %1040 = vmatpush1.bf16.msra.mxu1 %v1673_v27 }
  0xb4   :  { %1000 = vmatprep.subr.bf16.mxu0 %v1675_v28  ;;  %1041 = vmatprep.subr.bf16.mxu1 %v1678_v29 }
  0xb7   :  { %1001 = vmatpush1.bf16.msra.mxu0 %v1681_v34  ;;  %1042 = vmatpush1.bf16.msra.mxu1 %v1685_v35 }
  0xb8   :  { %1002 = vmatprep.subr.bf16.mxu0 %v1687_v36  ;;  %1043 = vmatprep.subr.bf16.mxu1 %v1690_v37 }
  0xbb   :  { %1003 = vmatpush1.bf16.msra.mxu0 %v1693_v42  ;;  %1044 = vmatpush1.bf16.msra.mxu1 %v1697_v43 }
  0xbc   :  { %1004 = vmatprep.subr.bf16.mxu0 %v1699_v44  ;;  %1045 = vmatprep.subr.bf16.mxu1 %v1702_v45 }
  0xbf   :  { %1005 = vmatpush1.bf16.msra.mxu0 %v1705_v50  ;;  %1046 = vmatpush1.bf16.msra.mxu1 %v1709_v51 }
  0xc0   :  { %1006 = vmatprep.subr.bf16.mxu0 %v1711_v52  ;;  %1047 = vmatprep.subr.bf16.mxu1 %v1714_v54 }
  0xc3   :  { %1007 = vmatpush1.bf16.msra.mxu0 %v1719_v60  ;;  %1048 = vmatpush1.bf16.msra.mxu1 %v1726_v62 }
  0xc4   :  { %1008 = vmatprep.subr.bf16.mxu0 %v1728_v63  ;;  %1049 = vmatprep.subr.bf16.mxu1 %v1731_v0 }
  0xc7   :  { %1009 = vmatpush1.bf16.msra.mxu0 %v1737_v11  ;;  %1050 = vmatpush1.bf16.msra.mxu1 %v1745_v13 }
  0xc8   :  { %1010 = vmatprep.subr.bf16.mxu0 %v1747_v15  ;;  %1051 = vmatprep.subr.bf16.mxu1 %v1750_v16 }
  0xcb   :  { %1011 = vmatpush1.bf16.msra.mxu0 %v1755_v25  ;;  %1052 = vmatpush1.bf16.msra.mxu1 %v1759_v30 }
  0xcc   :  { %1012 = vmatprep.subr.bf16.mxu0 %v1761_v31  ;;  %1053 = vmatprep.subr.bf16.mxu1 %v1764_v32  ;;  %v2616_v32 = vld [vmem:[#allocation24_spill] sm:$0xff] }
  0xcf   :  { %1013 = vmatpush1.bf16.msra.mxu0 %v1767_v41  ;;  %1054 = vmatpush1.bf16.msra.mxu1 %v1771_v46  ;;  %v2617_v41 = vld [vmem:[#allocation25_spill] sm:$0xff]  ;;  %v2618_v46 = vld [vmem:[#allocation26_spill] sm:$0xff] }
  0xd0   :  { %1014 = vmatprep.subr.bf16.mxu0 %v2608_v57  ;;  %1055 = vmatprep.subr.bf16.mxu1 %v2609_v49  ;;  %v2619_v49 = vld [vmem:[#allocation28_spill] sm:$0xff] }
  0xd3   :  { %1015 = vmatpush1.bf16.msra.mxu0 %v2610_v40  ;;  %1056 = vmatpush1.bf16.msra.mxu1 %v2611_v12  ;;  %v2620_v40 = vld [vmem:[#allocation29_spill] sm:$0xff]  ;;  %v2621_v12 = vld [vmem:[#allocation31_spill] sm:$0xff] }
  0xd4   :  { %1016 = vmatprep.subr.bf16.mxu0 %v2612_v23  ;;  %1057 = vmatprep.subr.bf16.mxu1 %v2613_v56  ;;  %v2622_v56 = vld [vmem:[#allocation33_spill] sm:$0xff] }
  0xd7   :  { %1017 = vmatpush1.bf16.msra.mxu0 %v2614_v2  ;;  %1058 = vmatpush1.bf16.msra.mxu1 %v2615_v53  ;;  %v2623_v2 = vld [vmem:[#allocation34_spill] sm:$0xff]  ;;  %v2624_v53 = vld [vmem:[#allocation36_spill] sm:$0xff] }
  0xd8   :  { %1018 = vmatprep.subr.bf16.mxu0 %v2616_v32  ;;  %1059 = vmatprep.subr.bf16.mxu1 %v2617_v41  ;;  %v2625_v32 = vld [vmem:[#allocation37_spill] sm:$0xff]  ;;  %v2626_v41 = vld [vmem:[#allocation38_spill] sm:$0xff] }
  0xdb   :  { %1019 = vmatpush1.bf16.msra.mxu0 %v2618_v46  ;;  %1060 = vmatpush1.bf16.msra.mxu1 %v1807_v55  ;;  %v2627_v46 = vld [vmem:[#allocation39_spill] sm:$0xff]  ;;  %v2628_v55 = vld [vmem:[#allocation30_spill] sm:$0xff] }
  0xdc   :  { %1020 = vmatprep.subr.bf16.mxu0 %v2619_v49  ;;  %1061 = vmatprep.subr.bf16.mxu1 %v2620_v40  ;;  %v2128_v49 = vpack.c.bf16 %v2628_v55, %v2628_v55  ;;  %v2629_v40 = vld [vmem:[#allocation41_spill] sm:$0xff]  ;;  %v2636_v55 = vld [vmem:[#allocation48_spill] sm:$0xff] }
  0xdf   :  { %1021 = vmatpush1.bf16.msra.mxu0 %v2621_v12  ;;  %1062 = vmatpush1.bf16.msra.mxu1 %v1821_v7  ;;  %v2630_v12 = vld [vmem:[#allocation42_spill] sm:$0xff]  ;;  %v2631_v7 = vld [vmem:[#allocation43_spill] sm:$0xff] }
  0xe0   :  { %1022 = vmatprep.subr.bf16.mxu0 %v2622_v56  ;;  %1063 = vmatprep.subr.bf16.mxu1 %v2623_v2  ;;  %v2632_v56 = vld [vmem:[#allocation44_spill] sm:$0xff]  ;;  %v2646_v2 = vld [vmem:[#allocation58_spill] sm:$0xff] }
  0xe3   :  { %1023 = vmatpush1.bf16.msra.mxu0 %v2624_v53  ;;  %1064 = vmatpush1.bf16.msra.mxu1 %v2625_v32  ;;  %v2633_v32 = vld [vmem:[#allocation45_spill] sm:$0xff] }
  0xe4   :  { %1024 = vmatprep.subr.bf16.mxu0 %v2626_v41  ;;  %1065 = vmatprep.subr.bf16.mxu1 %v2627_v46  ;;  %v2634_v41 = vld [vmem:[#allocation46_spill] sm:$0xff]  ;;  %v2635_v46 = vld [vmem:[#allocation47_spill] sm:$0xff]  ;;  %v2641_v53 = vld [vmem:[#allocation53_spill] sm:$0xff] }
  0xe7   :  { %1025 = vmatpush1.bf16.msra.mxu0 %v2629_v40  ;;  %1066 = vmatpush1.bf16.msra.mxu1 %v2630_v12  ;;  %v2637_v12 = vld [vmem:[#allocation49_spill] sm:$0xff]  ;;  %v2640_v40 = vld [vmem:[#allocation52_spill] sm:$0xff] }
  0xe8   :  { %1076 = vmatprep.subr.bf16.mxu0 %v2631_v7  ;;  %1117 = vmatprep.subr.bf16.mxu1 %v2632_v56  ;;  %v2638_v7 = vld [vmem:[#allocation50_spill] sm:$0xff]  ;;  %v2639_v56 = vld [vmem:[#allocation51_spill] sm:$0xff] }
  0xea   :  { %1027 = vmatmul.mubr.bf16.vlgmr.msra.gmra.mrb[0].mxu0 %v2128_v49  ;;  %1068 = vmatmul.mubr.bf16.vlgmr.msra.gmra.mrb[0].mxu1 %v2128_v49 }
  0xeb   :  { %1077 = vmatpush1.bf16.msra.mxu0 %v2633_v32  ;;  %1118 = vmatpush1.bf16.msra.mxu1 %v2634_v41  ;;  %v2642_v32 = vld [vmem:[#allocation54_spill] sm:$0xff]  ;;  %v2643_v41 = vld [vmem:[#allocation55_spill] sm:$0xff] }
  0xec   :  { %1078 = vmatprep.subr.bf16.mxu0 %v2635_v46  ;;  %1119 = vmatprep.subr.bf16.mxu1 %v2636_v55  ;;  %v2644_v46 = vld [vmem:[#allocation56_spill] sm:$0xff]  ;;  %v2645_v55 = vld [vmem:[#allocation57_spill] sm:$0xff] }
  0xed   :  { %1108 = vmatprep.mubr.bf16.mxu0 %v2060_v24  ;;  %1149 = vmatprep.mubr.bf16.mxu1 %v2060_v24  ;;  %v2647_v24 = vld [vmem:[#allocation59_spill] sm:$0xff] }
  0xef   :  { %1079 = vmatpush1.bf16.msra.mxu0 %v2637_v12  ;;  %1120 = vmatpush1.bf16.msra.mxu1 %v2638_v7  ;;  %v2648_v12 = vld [vmem:[#allocation60_spill] sm:$0xff]  ;;  %v2649_v7 = vld [vmem:[#allocation61_spill] sm:$0xff] }
  0xf0   :  { %1080 = vmatprep.subr.bf16.mxu0 %v2639_v56  ;;  %1121 = vmatprep.subr.bf16.mxu1 %v2640_v40  ;;  %v2650_v56 = vld [vmem:[#allocation62_spill] sm:$0xff]  ;;  %v2651_v40 = vld [vmem:[#allocation63_spill] sm:$0xff] }
  0xf3   :  { %1081 = vmatpush1.bf16.msra.mxu0 %v2641_v53  ;;  %1122 = vmatpush1.bf16.msra.mxu1 %v2642_v32  ;;  %v2652_v53 = vld [vmem:[#allocation64_spill] sm:$0xff]  ;;  %v2653_v32 = vld [vmem:[#allocation65_spill] sm:$0xff] }
  0xf4   :  { %1082 = vmatprep.subr.bf16.mxu0 %v2643_v41  ;;  %1123 = vmatprep.subr.bf16.mxu1 %v2644_v46  ;;  %v2654_v41 = vld [vmem:[#allocation66_spill] sm:$0xff]  ;;  %v2655_v46 = vld [vmem:[#allocation67_spill] sm:$0xff] }
  0xf7   :  { %1083 = vmatpush1.bf16.msra.mxu0 %v2645_v55  ;;  %1124 = vmatpush1.bf16.msra.mxu1 %v2646_v2  ;;  %v2656_v55 = vld [vmem:[#allocation68_spill] sm:$0xff]  ;;  %v2657_v2 = vld [vmem:[#allocation69_spill] sm:$0xff] }
  0xf8   :  { %1084 = vmatprep.subr.bf16.mxu0 %v2647_v24  ;;  %1125 = vmatprep.subr.bf16.mxu1 %v2648_v12  ;;  %v2658_v24 = vld [vmem:[#allocation70_spill] sm:$0xff]  ;;  %v2659_v12 = vld [vmem:[#allocation71_spill] sm:$0xff] }
  0xfb   :  { %1085 = vmatpush1.bf16.msra.mxu0 %v2649_v7  ;;  %1126 = vmatpush1.bf16.msra.mxu1 %v2650_v56  ;;  %v2660_v7 = vld [vmem:[#allocation72_spill] sm:$0xff]  ;;  %v2661_v56 = vld [vmem:[#allocation73_spill] sm:$0xff] }
  0xfc   :  { %1086 = vmatprep.subr.bf16.mxu0 %v2651_v40  ;;  %1127 = vmatprep.subr.bf16.mxu1 %v2652_v53  ;;  %v2662_v40 = vld [vmem:[#allocation74_spill] sm:$0xff]  ;;  %v2663_v53 = vld [vmem:[#allocation75_spill] sm:$0xff] }
  0xff   :  { %1087 = vmatpush1.bf16.msra.mxu0 %v2653_v32  ;;  %1128 = vmatpush1.bf16.msra.mxu1 %v2654_v41  ;;  %v2664_v32 = vld [vmem:[#allocation76_spill] sm:$0xff]  ;;  %v2665_v41 = vld [vmem:[#allocation77_spill] sm:$0xff] }
 0x100   :  { %1088 = vmatprep.subr.bf16.mxu0 %v2655_v46  ;;  %1129 = vmatprep.subr.bf16.mxu1 %v2656_v55  ;;  %v2666_v46 = vld [vmem:[#allocation78_spill] sm:$0xff]  ;;  %v2667_v55 = vld [vmem:[#allocation79_spill] sm:$0xff] }
 0x103   :  { %1089 = vmatpush1.bf16.msra.mxu0 %v2657_v2  ;;  %1130 = vmatpush1.bf16.msra.mxu1 %v2658_v24  ;;  %v2668_v2 = vld [vmem:[#allocation80_spill] sm:$0xff]  ;;  %v2669_v24 = vld [vmem:[#allocation81_spill] sm:$0xff] }
 0x104   :  { %1090 = vmatprep.subr.bf16.mxu0 %v2659_v12  ;;  %1131 = vmatprep.subr.bf16.mxu1 %v2660_v7  ;;  %v2670_v12 = vld [vmem:[#allocation82_spill] sm:$0xff]  ;;  %v2671_v7 = vld [vmem:[#allocation83_spill] sm:$0xff] }
 0x107   :  { %1091 = vmatpush1.bf16.msra.mxu0 %v2661_v56  ;;  %1132 = vmatpush1.bf16.msra.mxu1 %v2662_v40  ;;  %v2672_v56 = vld [vmem:[#allocation84_spill] sm:$0xff]  ;;  %v2673_v40 = vld [vmem:[#allocation85_spill] sm:$0xff] }
 0x108   :  { %1092 = vmatprep.subr.bf16.mxu0 %v2663_v53  ;;  %1133 = vmatprep.subr.bf16.mxu1 %v2664_v32  ;;  %v2674_v53 = vld [vmem:[#allocation86_spill] sm:$0xff]  ;;  %v2675_v32 = vld [vmem:[#allocation87_spill] sm:$0xff] }
 0x10b   :  { %1093 = vmatpush1.bf16.msra.mxu0 %v2665_v41  ;;  %1134 = vmatpush1.bf16.msra.mxu1 %v2666_v46  ;;  %v2676_v41 = vld [vmem:[#allocation88_spill] sm:$0xff]  ;;  %v2677_v46 = vld [vmem:[#allocation89_spill] sm:$0xff] }
 0x10c   :  { %1094 = vmatprep.subr.bf16.mxu0 %v2667_v55  ;;  %1135 = vmatprep.subr.bf16.mxu1 %v2668_v2  ;;  %v2678_v55 = vld [vmem:[#allocation90_spill] sm:$0xff]  ;;  %v2679_v2 = vld [vmem:[#allocation91_spill] sm:$0xff] }
 0x10f   :  { %1095 = vmatpush1.bf16.msra.mxu0 %v2669_v24  ;;  %1136 = vmatpush1.bf16.msra.mxu1 %v2670_v12  ;;  %v2680_v24 = vld [vmem:[#allocation92_spill] sm:$0xff] }
 0x110   :  { %1096 = vmatprep.subr.bf16.mxu0 %v2671_v7  ;;  %1137 = vmatprep.subr.bf16.mxu1 %v2672_v56 }
 0x113   :  { %1097 = vmatpush1.bf16.msra.mxu0 %v2673_v40  ;;  %1138 = vmatpush1.bf16.msra.mxu1 %v2674_v53  ;;  %v2681_v40 = vld [vmem:[#allocation96_spill] sm:$0xff] }
 0x114   :  { %1098 = vmatprep.subr.bf16.mxu0 %v2675_v32  ;;  %1139 = vmatprep.subr.bf16.mxu1 %v2676_v41 }
 0x117   :  { %1099 = vmatpush1.bf16.msra.mxu0 %v2677_v46  ;;  %1140 = vmatpush1.bf16.msra.mxu1 %v2678_v55 }
 0x118   :  { %1100 = vmatprep.subr.bf16.mxu0 %v2679_v2  ;;  %1141 = vmatprep.subr.bf16.mxu1 %v2680_v24 }
 0x11b   :  { %1101 = vmatpush1.bf16.msra.mxu0 %v2011_v22  ;;  %1142 = vmatpush1.bf16.msra.mxu1 %v2015_v33  ;;  %v2682_v33 = vld [vmem:[#allocation12_spill] sm:$0xff] }
 0x11c   :  { %1102 = vmatprep.subr.bf16.mxu0 %v2017_v17  ;;  %1143 = vmatprep.subr.bf16.mxu1 %v2681_v40  ;;  %v2683_v17 = vld [vmem:[#allocation11_spill] sm:$0xff] }
 0x11d   :  { %v183_v22 = vsub.f32 %v2683_v17, %v2682_v33  ;;  %v2720_v33 = vld [vmem:[#allocation52_spill] sm:$0xff]  ;;  %v2721_v17 = vld [vmem:[#allocation53_spill] sm:$0xff] }
 0x11f   :  { %1103 = vmatpush1.bf16.msra.mxu0 %v2023_v39  ;;  %1144 = vmatpush1.bf16.msra.mxu1 %v2027_v4 }
 0x120   :  { %1104 = vmatprep.subr.bf16.mxu0 %v2029_v6  ;;  %1145 = vmatprep.subr.bf16.mxu1 %v2032_v59  ;;  %v2204_v59 = vpack.c.bf16 %v183_v22, %v183_v22  ;;  %v2719_v22 = vld [vmem:[#allocation51_spill] sm:$0xff] }
 0x123   :  { %1105 = vmatpush1.bf16.msra.mxu0 %v2035_v61  ;;  %1146 = vmatpush1.bf16.msra.mxu1 %v2039_v48 }
 0x124   :  { %1106 = vmatprep.subr.bf16.mxu0 %v2041_v58  ;;  %1147 = vmatprep.subr.bf16.mxu1 %v2044_v1 }
 0x127   :  { %1107 = vmatpush1.bf16.msra.mxu0 %v2047_v38  ;;  %1148 = vmatpush1.bf16.msra.mxu1 %v2051_v47 }
 0x128   :  { %1158 = vmatprep.subr.bf16.mxu0 %v1642_v3  ;;  %1199 = vmatprep.subr.bf16.mxu1 %v1646_v8  ;;  %v2684_v3 = vld [vmem:[#allocation13_spill] sm:$0xff]  ;;  %v2686_v8 = vld [vmem:[#allocation15_spill] sm:$0xff] }
 0x12a   :  { %1109 = vmatmul.mubr.bf16.vlgmr.msra.gmra.mrb[4].mxu0 %v2128_v49  ;;  %1150 = vmatmul.mubr.bf16.vlgmr.msra.gmra.mrb[4].mxu1 %v2128_v49  ;;  %v2723_v49 = vld [vmem:[#allocation55_spill] sm:$0xff] }
 0x12b   :  { %1159 = vmatpush1.bf16.msra.mxu0 %v1644_v5  ;;  %1200 = vmatpush1.bf16.msra.mxu1 %v1648_v9  ;;  %v2685_v5 = vld [vmem:[#allocation14_spill] sm:$0xff]  ;;  %v2687_v9 = vld [vmem:[#allocation17_spill] sm:$0xff] }
 0x12c   :  { %1160 = vmatprep.subr.bf16.mxu0 %v1650_v10  ;;  %1201 = vmatprep.subr.bf16.mxu1 %v1653_v14  ;;  %v2688_v10 = vld [vmem:[#allocation18_spill] sm:$0xff]  ;;  %v2689_v14 = vld [vmem:[#allocation19_spill] sm:$0xff] }
 0x12d   :  { %1190 = vmatprep.mubr.bf16.mxu0 %v2204_v59  ;;  %1231 = vmatprep.mubr.bf16.mxu1 %v2204_v59 }
 0x12f   :  { %1161 = vmatpush1.bf16.msra.mxu0 %v1657_v18  ;;  %1202 = vmatpush1.bf16.msra.mxu1 %v1661_v19  ;;  %v2690_v18 = vld [vmem:[#allocation21_spill] sm:$0xff]  ;;  %v2691_v19 = vld [vmem:[#allocation22_spill] sm:$0xff] }
 0x130   :  { %1162 = vmatprep.subr.bf16.mxu0 %v1663_v20  ;;  %1203 = vmatprep.subr.bf16.mxu1 %v1666_v21  ;;  %v2692_v20 = vld [vmem:[#allocation23_spill] sm:$0xff]  ;;  %v2693_v21 = vld [vmem:[#allocation24_spill] sm:$0xff] }
 0x133   :  { %1163 = vmatpush1.bf16.msra.mxu0 %v1669_v26  ;;  %1204 = vmatpush1.bf16.msra.mxu1 %v1673_v27  ;;  %v2694_v26 = vld [vmem:[#allocation25_spill] sm:$0xff]  ;;  %v2695_v27 = vld [vmem:[#allocation26_spill] sm:$0xff] }
 0x134   :  { %1164 = vmatprep.subr.bf16.mxu0 %v1675_v28  ;;  %1205 = vmatprep.subr.bf16.mxu1 %v1678_v29  ;;  %v2696_v28 = vld [vmem:[#allocation27_spill] sm:$0xff]  ;;  %v2697_v29 = vld [vmem:[#allocation28_spill] sm:$0xff] }
 0x137   :  { %1165 = vmatpush1.bf16.msra.mxu0 %v1681_v34  ;;  %1206 = vmatpush1.bf16.msra.mxu1 %v1685_v35  ;;  %v2698_v34 = vld [vmem:[#allocation29_spill] sm:$0xff]  ;;  %v2699_v35 = vld [vmem:[#allocation31_spill] sm:$0xff] }
 0x138   :  { %1166 = vmatprep.subr.bf16.mxu0 %v1687_v36  ;;  %1207 = vmatprep.subr.bf16.mxu1 %v1690_v37  ;;  %v2700_v36 = vld [vmem:[#allocation32_spill] sm:$0xff]  ;;  %v2701_v37 = vld [vmem:[#allocation33_spill] sm:$0xff] }
 0x13b   :  { %1167 = vmatpush1.bf16.msra.mxu0 %v1693_v42  ;;  %1208 = vmatpush1.bf16.msra.mxu1 %v1697_v43  ;;  %v2702_v42 = vld [vmem:[#allocation34_spill] sm:$0xff]  ;;  %v2703_v43 = vld [vmem:[#allocation40_spill] sm:$0xff] }
 0x13c   :  { %1168 = vmatprep.subr.bf16.mxu0 %v1699_v44  ;;  %1209 = vmatprep.subr.bf16.mxu1 %v1702_v45  ;;  %v2704_v44 = vld [vmem:[#allocation35_spill] sm:$0xff] }
 0x13d   :  { %v182_v45 = vsub.f32 %v2704_v44, %v2703_v43  ;;  %v2745_v43 = vld [vmem:[#allocation77_spill] sm:$0xff]  ;;  %v2746_v44 = vld [vmem:[#allocation78_spill] sm:$0xff] }
 0x13f   :  { %1169 = vmatpush1.bf16.msra.mxu0 %v1705_v50  ;;  %1210 = vmatpush1.bf16.msra.mxu1 %v1709_v51  ;;  %v2705_v50 = vld [vmem:[#allocation36_spill] sm:$0xff]  ;;  %v2706_v51 = vld [vmem:[#allocation37_spill] sm:$0xff] }
 0x140   :  { %1170 = vmatprep.subr.bf16.mxu0 %v1711_v52  ;;  %1211 = vmatprep.subr.bf16.mxu1 %v1714_v54  ;;  %v2707_v52 = vld [vmem:[#allocation38_spill] sm:$0xff]  ;;  %v2708_v54 = vld [vmem:[#allocation39_spill] sm:$0xff] }
 0x143   :  { %1171 = vmatpush1.bf16.msra.mxu0 %v1719_v60  ;;  %1212 = vmatpush1.bf16.msra.mxu1 %v1726_v62  ;;  %v2272_v60 = vpack.c.bf16 %v182_v45, %v182_v45  ;;  %v2709_v62 = vld [vmem:[#allocation41_spill] sm:$0xff]  ;;  %v2747_v45 = vld [vmem:[#allocation79_spill] sm:$0xff] }
 0x144   :  { %1172 = vmatprep.subr.bf16.mxu0 %v1728_v63  ;;  %1213 = vmatprep.subr.bf16.mxu1 %v1731_v0  ;;  %v2710_v63 = vld [vmem:[#allocation42_spill] sm:$0xff]  ;;  %v2711_v0 = vld [vmem:[#allocation43_spill] sm:$0xff] }
 0x147   :  { %1173 = vmatpush1.bf16.msra.mxu0 %v1737_v11  ;;  %1214 = vmatpush1.bf16.msra.mxu1 %v1745_v13  ;;  %v2712_v11 = vld [vmem:[#allocation44_spill] sm:$0xff]  ;;  %v2713_v13 = vld [vmem:[#allocation45_spill] sm:$0xff] }
 0x148   :  { %1174 = vmatprep.subr.bf16.mxu0 %v1747_v15  ;;  %1215 = vmatprep.subr.bf16.mxu1 %v1750_v16  ;;  %v2714_v15 = vld [vmem:[#allocation46_spill] sm:$0xff]  ;;  %v2715_v16 = vld [vmem:[#allocation47_spill] sm:$0xff] }
 0x14b   :  { %1175 = vmatpush1.bf16.msra.mxu0 %v1755_v25  ;;  %1216 = vmatpush1.bf16.msra.mxu1 %v1759_v30  ;;  %v2716_v25 = vld [vmem:[#allocation48_spill] sm:$0xff]  ;;  %v2717_v30 = vld [vmem:[#allocation49_spill] sm:$0xff] }
 0x14c   :  { %1176 = vmatprep.subr.bf16.mxu0 %v1761_v31  ;;  %1217 = vmatprep.subr.bf16.mxu1 %v2684_v3  ;;  %v2718_v31 = vld [vmem:[#allocation50_spill] sm:$0xff]  ;;  %v2725_v3 = vld [vmem:[#allocation57_spill] sm:$0xff] }
 0x14f   :  { %1177 = vmatpush1.bf16.msra.mxu0 %v2685_v5  ;;  %1218 = vmatpush1.bf16.msra.mxu1 %v2686_v8  ;;  %v2726_v5 = vld [vmem:[#allocation58_spill] sm:$0xff]  ;;  %v2728_v8 = vld [vmem:[#allocation60_spill] sm:$0xff] }
 0x150   :  { %1178 = vmatprep.subr.bf16.mxu0 %v2608_v57  ;;  %1219 = vmatprep.subr.bf16.mxu1 %v2687_v9  ;;  %v2722_v57 = vld [vmem:[#allocation54_spill] sm:$0xff]  ;;  %v2729_v9 = vld [vmem:[#allocation61_spill] sm:$0xff] }
 0x153   :  { %1179 = vmatpush1.bf16.msra.mxu0 %v2688_v10  ;;  %1220 = vmatpush1.bf16.msra.mxu1 %v2689_v14  ;;  %v2730_v10 = vld [vmem:[#allocation62_spill] sm:$0xff]  ;;  %v2731_v14 = vld [vmem:[#allocation63_spill] sm:$0xff] }
 0x154   :  { %1180 = vmatprep.subr.bf16.mxu0 %v2612_v23  ;;  %1221 = vmatprep.subr.bf16.mxu1 %v2690_v18  ;;  %v2724_v23 = vld [vmem:[#allocation56_spill] sm:$0xff] }
 0x155   :  { %v2732_v18 = vld [vmem:[#allocation64_spill] sm:$0xff] }
 0x157   :  { %1181 = vmatpush1.bf16.msra.mxu0 %v2691_v19  ;;  %1222 = vmatpush1.bf16.msra.mxu1 %v2692_v20  ;;  %v2733_v19 = vld [vmem:[#allocation65_spill] sm:$0xff]  ;;  %v2734_v20 = vld [vmem:[#allocation66_spill] sm:$0xff] }
 0x158   :  { %1182 = vmatprep.subr.bf16.mxu0 %v2693_v21  ;;  %1223 = vmatprep.subr.bf16.mxu1 %v2694_v26  ;;  %v2735_v21 = vld [vmem:[#allocation67_spill] sm:$0xff]  ;;  %v2736_v26 = vld [vmem:[#allocation68_spill] sm:$0xff] }
 0x15b   :  { %1183 = vmatpush1.bf16.msra.mxu0 %v2695_v27  ;;  %1224 = vmatpush1.bf16.msra.mxu1 %v2696_v28  ;;  %v2737_v27 = vld [vmem:[#allocation69_spill] sm:$0xff]  ;;  %v2738_v28 = vld [vmem:[#allocation70_spill] sm:$0xff] }
 0x15c   :  { %1184 = vmatprep.subr.bf16.mxu0 %v2697_v29  ;;  %1225 = vmatprep.subr.bf16.mxu1 %v2698_v34  ;;  %v2739_v29 = vld [vmem:[#allocation71_spill] sm:$0xff]  ;;  %v2740_v34 = vld [vmem:[#allocation72_spill] sm:$0xff] }
 0x15f   :  { %1185 = vmatpush1.bf16.msra.mxu0 %v2699_v35  ;;  %1226 = vmatpush1.bf16.msra.mxu1 %v2700_v36  ;;  %v2741_v35 = vld [vmem:[#allocation73_spill] sm:$0xff]  ;;  %v2742_v36 = vld [vmem:[#allocation74_spill] sm:$0xff] }
 0x160   :  { %1186 = vmatprep.subr.bf16.mxu0 %v2701_v37  ;;  %1227 = vmatprep.subr.bf16.mxu1 %v2702_v42  ;;  %v2743_v37 = vld [vmem:[#allocation75_spill] sm:$0xff]  ;;  %v2744_v42 = vld [vmem:[#allocation76_spill] sm:$0xff] }
 0x163   :  { %1187 = vmatpush1.bf16.msra.mxu0 %v2705_v50  ;;  %1228 = vmatpush1.bf16.msra.mxu1 %v2706_v51  ;;  %v2748_v50 = vld [vmem:[#allocation80_spill] sm:$0xff]  ;;  %v2749_v51 = vld [vmem:[#allocation81_spill] sm:$0xff] }
 0x164   :  { %1188 = vmatprep.subr.bf16.mxu0 %v2707_v52  ;;  %1229 = vmatprep.subr.bf16.mxu1 %v2708_v54  ;;  %v2750_v52 = vld [vmem:[#allocation85_spill] sm:$0xff] }
 0x167   :  { %1189 = vmatpush1.bf16.msra.mxu0 %v2709_v62  ;;  %1230 = vmatpush1.bf16.msra.mxu1 %v2710_v63 }
 0x168   :  { %1240 = vmatprep.subr.bf16.mxu0 %v2711_v0  ;;  %1281 = vmatprep.subr.bf16.mxu1 %v2712_v11 }
 0x16a   :  { %1191 = vmatmul.mubr.bf16.vlgmr.msra.gmra.mrb[0].mxu0 %v2272_v60  ;;  %1232 = vmatmul.mubr.bf16.vlgmr.msra.gmra.mrb[0].mxu1 %v2272_v60 }
 0x16b   :  { %1241 = vmatpush1.bf16.msra.mxu0 %v2713_v13  ;;  %1282 = vmatpush1.bf16.msra.mxu1 %v2714_v15 }
 0x16c   :  { %1242 = vmatprep.subr.bf16.mxu0 %v2715_v16  ;;  %1283 = vmatprep.subr.bf16.mxu1 %v2716_v25 }
 0x16d   :  { %1272 = vmatprep.mubr.bf16.mxu0 %v2204_v59  ;;  %1313 = vmatprep.mubr.bf16.mxu1 %v2204_v59  ;;  %v2727_v59 = vld [vmem:[#allocation59_spill] sm:$0xff] }
 0x16f   :  { %1243 = vmatpush1.bf16.msra.mxu0 %v2717_v30  ;;  %1284 = vmatpush1.bf16.msra.mxu1 %v2718_v31 }
 0x170   :  { %1244 = vmatprep.subr.bf16.mxu0 %v2719_v22  ;;  %1285 = vmatprep.subr.bf16.mxu1 %v2720_v33 }
 0x173   :  { %1245 = vmatpush1.bf16.msra.mxu0 %v2721_v17  ;;  %1286 = vmatpush1.bf16.msra.mxu1 %v2722_v57 }
 0x174   :  { %1246 = vmatprep.subr.bf16.mxu0 %v2723_v49  ;;  %1287 = vmatprep.subr.bf16.mxu1 %v2724_v23 }
 0x177   :  { %1247 = vmatpush1.bf16.msra.mxu0 %v2725_v3  ;;  %1288 = vmatpush1.bf16.msra.mxu1 %v2726_v5 }
 0x178   :  { %1248 = vmatprep.subr.bf16.mxu0 %v2727_v59  ;;  %1289 = vmatprep.subr.bf16.mxu1 %v2728_v8 }
 0x17b   :  { %1249 = vmatpush1.bf16.msra.mxu0 %v2729_v9  ;;  %1290 = vmatpush1.bf16.msra.mxu1 %v2730_v10 }
 0x17c   :  { %1250 = vmatprep.subr.bf16.mxu0 %v2731_v14  ;;  %1291 = vmatprep.subr.bf16.mxu1 %v2732_v18 }
 0x17f   :  { %1251 = vmatpush1.bf16.msra.mxu0 %v2733_v19  ;;  %1292 = vmatpush1.bf16.msra.mxu1 %v2734_v20 }
 0x180   :  { %1252 = vmatprep.subr.bf16.mxu0 %v2735_v21  ;;  %1293 = vmatprep.subr.bf16.mxu1 %v2736_v26 }
 0x183   :  { %1253 = vmatpush1.bf16.msra.mxu0 %v2737_v27  ;;  %1294 = vmatpush1.bf16.msra.mxu1 %v2738_v28 }
 0x184   :  { %1254 = vmatprep.subr.bf16.mxu0 %v2739_v29  ;;  %1295 = vmatprep.subr.bf16.mxu1 %v2740_v34 }
 0x187   :  { %1255 = vmatpush1.bf16.msra.mxu0 %v2741_v35  ;;  %1296 = vmatpush1.bf16.msra.mxu1 %v2742_v36 }
 0x188   :  { %1256 = vmatprep.subr.bf16.mxu0 %v2743_v37  ;;  %1297 = vmatprep.subr.bf16.mxu1 %v2744_v42 }
 0x18b   :  { %1257 = vmatpush1.bf16.msra.mxu0 %v2745_v43  ;;  %1298 = vmatpush1.bf16.msra.mxu1 %v2746_v44 }
 0x18c   :  { %1258 = vmatprep.subr.bf16.mxu0 %v2747_v45  ;;  %1299 = vmatprep.subr.bf16.mxu1 %v2748_v50 }
 0x18f   :  { %1259 = vmatpush1.bf16.msra.mxu0 %v2749_v51  ;;  %1300 = vmatpush1.bf16.msra.mxu1 %v2670_v12  ;;  %v2751_v12 = vld [vmem:[#allocation93_spill] sm:$0xff] }
 0x190   :  { %1260 = vmatprep.subr.bf16.mxu0 %v2671_v7  ;;  %1301 = vmatprep.subr.bf16.mxu1 %v2672_v56  ;;  %v2752_v7 = vld [vmem:[#allocation94_spill] sm:$0xff]  ;;  %v2753_v56 = vld [vmem:[#allocation95_spill] sm:$0xff] }
 0x193   :  { %1261 = vmatpush1.bf16.msra.mxu0 %v2750_v52  ;;  %1302 = vmatpush1.bf16.msra.mxu1 %v2674_v53 }
 0x194   :  { %1262 = vmatprep.subr.bf16.mxu0 %v2675_v32  ;;  %1303 = vmatprep.subr.bf16.mxu1 %v2676_v41  ;;  %v2754_v32 = vld [vmem:[#allocation97_spill] sm:$0xff] }
 0x197   :  { %1263 = vmatpush1.bf16.msra.mxu0 %v2677_v46  ;;  %1304 = vmatpush1.bf16.msra.mxu1 %v2678_v55 }
 0x198   :  { %1264 = vmatprep.subr.bf16.mxu0 %v2679_v2  ;;  %1305 = vmatprep.subr.bf16.mxu1 %v2680_v24 }
 0x19b   :  { %1265 = vmatpush1.bf16.msra.mxu0 %v2751_v12  ;;  %1306 = vmatpush1.bf16.msra.mxu1 %v2752_v7 }
 0x19c   :  { %1266 = vmatprep.subr.bf16.mxu0 %v2753_v56  ;;  %1307 = vmatprep.subr.bf16.mxu1 %v2681_v40 }
 0x19f   :  { %1267 = vmatpush1.bf16.msra.mxu0 %v2023_v39  ;;  %1308 = vmatpush1.bf16.msra.mxu1 %v2027_v4 }
 0x1a0   :  { %1268 = vmatprep.subr.bf16.mxu0 %v2029_v6  ;;  %1309 = vmatprep.subr.bf16.mxu1 %v2754_v32 }
 0x1a3   :  { %1269 = vmatpush1.bf16.msra.mxu0 %v2035_v61  ;;  %1310 = vmatpush1.bf16.msra.mxu1 %v2039_v48 }
 0x1a4   :  { %1270 = vmatprep.subr.bf16.mxu0 %v2041_v58  ;;  %1311 = vmatprep.subr.bf16.mxu1 %v2044_v1 }
 0x1a7   :  { %1271 = vmatpush1.bf16.msra.mxu0 %v2047_v38  ;;  %1312 = vmatpush1.bf16.msra.mxu1 %v2051_v47 }
 0x1aa   :  { %1273 = vmatmul.mubr.bf16.vlgmr.msra.gmra.mrb[4].mxu0 %v2272_v60  ;;  %1314 = vmatmul.mubr.bf16.vlgmr.msra.gmra.mrb[4].mxu1 %v2272_v60 }
 0x23d   :  { %v1192_v41 = vpop.f32.mrb[0].mxu0  ;;  %v1233_v46 = vpop.f32.mrb[0].mxu1 }
 0x23e   :  { %1330 = vst [vmem:[#allocation7] sm:$0xff] %v1192_v41  ;;  %v1194_v39 = vpop.f32.mrb[1].mxu0  ;;  %1332 = vst [vmem:[#allocation7 + $0x10] sm:$0xff] %v1233_v46  ;;  %v1235_v4 = vpop.f32.mrb[1].mxu1 }
 0x23f   :  { %1331 = vst [vmem:[#allocation7 + $0x8] sm:$0xff] %v1194_v39  ;;  %v1196_v6 = vpop.f32.mrb[2].mxu0  ;;  %1333 = vst [vmem:[#allocation7 + $0x18] sm:$0xff] %v1235_v4  ;;  %v1237_v61 = vpop.f32.mrb[2].mxu1 }
 0x240   :  { %v1197_v48 = vpop.f32.mrb[3].mxu0  ;;  %v1238_v58 = vpop.f32.mrb[3].mxu1 }
 0x27d   :  { %v1274_v38 = vpop.f32.mrb[4].mxu0  ;;  %v1315_v1 = vpop.f32.mrb[4].mxu1 }
 0x27e   :  { %1334 = vst [vmem:[#allocation7 + $0x20] sm:$0xff] %v1274_v38  ;;  %v1276_v47 = vpop.f32.mrb[5].mxu0  ;;  %1336 = vst [vmem:[#allocation7 + $0x30] sm:$0xff] %v1315_v1  ;;  %v1317_v40 = vpop.f32.mrb[5].mxu1 }
 0x27f   :  { %1335 = vst [vmem:[#allocation7 + $0x28] sm:$0xff] %v1276_v47  ;;  %v1278_v2 = vpop.f32.mrb[6].mxu0  ;;  %1337 = vst [vmem:[#allocation7 + $0x38] sm:$0xff] %v1317_v40  ;;  %v1319_v53 = vpop.f32.mrb[6].mxu1 }
 0x280   :  { %v1279_v55 = vpop.f32.mrb[7].mxu0  ;;  %v1320_v24 = vpop.f32.mrb[7].mxu1 }
 0x281   :  { %1574 = shalt.err (!%p1571_p6)
}
 0x282   :  { %s1575_s10 = scalar_lea.hbm %s2360_s2, 1024 }
 0x283   :  { %p1576_p7 = scmp.ne.s32.totalorder %s2360_s2, %s1575_s10  ;;  %p1579_p8 = scmp.lt.u32.totalorder %s1575_s10, %s2360_s2 }
 0x285   :  { %p1581_p9 = pnand %p1579_p8, %p1576_p7 }
 0x287   :  { %1584 = shalt.err (!%p1581_p9)
}
 0x288   :  { %1347 = dma.vmem_to_hbm [thread:$0]  %s1345_s6, 1024, %s2360_s2, [#allocation4]  }
 0x289   :  { %1589 = dma.done.wait [#allocation4], 1024  }
 0x28a   :  { %1590 = vsyncadd [#allocation4], 4294966272 }
 0x28b   :  { %1351 = vsyncpa [#allocation3], 1 }
 0x28c   :  { %1352 = vsyncpa [#allocation6], 1 }
 0x28d   :  { %1353 = vsyncpa [#allocation4], 1 }

</bundles_post_ra>
